<compile_context>
chip_gen: v7x
topology: tpu7x:2x2x1
jax: 0.10.0
libtpu: 0.0.40
codegen_flags: <defaults>
</compile_context>

<pallas_src>
import numpy as np
import jax
import jax.numpy as jnp
from jax.experimental import pallas as pl
from jax.experimental.pallas import tpu as pltpu

# ----------------------------- config (small, consistent with module) -------------------
B = 2            # batch
T = 8            # sequence length
H = 64           # hidden_size
MLP = 128        # mlp_size
HD = 16          # attention_head_size
NH = 4           # num_attention_heads
NIAF = 2         # num_iaf_attention_heads
NBID = NH - NIAF
R = 4            # num_registers
NLAYERS = 2
Z_TOTAL = 32     # config.z_size
Z = Z_TOTAL // NLAYERS          # per-layer z_size = 16
QKV = HD * NH                   # 64
ROPE_FRACTION = 2
ROPE_DIM = HD // ROPE_FRACTION  # 8
HALF = ROPE_DIM // 2            # 4
ROPE_BASE = 10000.0
EPS = 1e-5

BT = B * T
KW = BT + R                     # flattened key width (sequence rows + registers)
OUT_W = H + 3 * Z               # packed payload width (hidden | z | mu | sigma) = 112
OUT_PAD = 128                   # lane-dense (unmasked-store) output width

Z_SCALE = float(np.sqrt(1.0 / Z_TOTAL))      # module uses sqrt(1 / config.z_size)
SOFTPLUS_SHIFT = float(np.log(np.e - 1.0))
ATTN_SCALE = float(1.0 / np.sqrt(HD))
NEG_INF = -1e30


# ----------------------------- Pallas kernel ---------------------------------------------
def zlm_encoder_layer_kernel(hs_ref, noise_ref, nnoise_ref, mask_iaf_ref, mask_bid_ref,
                             ln_w_ref, ln_b_ref, alpha_ref,
                             wz_ref, wqkv_ref, kreg_ref, vreg_ref,
                             cos_ref, sina_ref, sinb_ref,
                             wmlp_ref, wdown_ref,
                             out_ref):
    f32 = jnp.float32
    bf16 = jnp.bfloat16

    hs = hs_ref[...]                       # [BT, H]  (batch flattened into rows)
    noise = noise_ref[...]                 # [BT, Z]
    nnoise = nnoise_ref[...]               # [BT, Z]

    # ---- ReZeroIO.enter : LayerNorm ------------------------------------------------------
    mean = jnp.mean(hs, axis=-1, keepdims=True)
    cent = hs - mean
    var = jnp.mean(cent * cent, axis=-1, keepdims=True)
    x = cent * jax.lax.rsqrt(var + EPS) * ln_w_ref[...] + ln_b_ref[...]

    # ---- z_proj (Z_SCALE folded into the weight) + stable softplus reparameterization ----
    zp = jnp.dot(x.astype(bf16), wz_ref[...], preferred_element_type=f32)    # [BT, 2Z]
    mu = zp[:, :Z]
    u = zp[:, Z:] + SOFTPLUS_SHIFT
    sigma = jnp.maximum(u, 0.0) + jnp.log(1.0 + jnp.exp(-jnp.abs(u)))        # softplus(u)
    z = mu + sigma * noise

    # ---- attn_proj : one fused masked matmul over concat([x, z, next_noise]) -------------
    qkv_in = jnp.concatenate([x, z, nnoise], axis=-1).astype(bf16)           # [BT, H+2Z]
    qkv = jnp.dot(qkv_in, wqkv_ref[...], preferred_element_type=f32)         # [BT, 3*QKV]
    q = qkv[:, :QKV]             # ATTN_SCALE already folded into the Q columns of the weight
    k = qkv[:, QKV:2 * QKV]
    v = qkv[:, 2 * QKV:]

    # ---- RoPE, vectorized over the full [BT, QKV] width -----------------------------------
    cos_t = cos_ref[...]         # [BT, QKV]: cos on rope lanes, 1 elsewhere
    sin_a = sina_ref[...]        # -sin on first-half rope lanes, 0 elsewhere
    sin_b = sinb_ref[...]        # +sin on second-half rope lanes, 0 elsewhere

    def rope(t):
        # rotate-half within each head's rope region; sin_a/sin_b are zero outside it,
        # so wrap-around / cross-head lanes of the rolls never contribute.
        return (t * cos_t
                + jnp.roll(t, QKV - HALF, axis=1) * sin_a    # brings x[l+HALF] to lane l
                + jnp.roll(t, HALF, axis=1) * sin_b)         # brings x[l-HALF] to lane l

    qr = rope(q)
    kr = rope(k)

    # ---- attention (flat 2-D form); registers appended as extra key/value rows ------------
    k_all = jnp.concatenate([kr, kreg_ref[...]], axis=0)     # [BT+R, QKV] (registers un-roped)
    v_all = jnp.concatenate([v, vreg_ref[...]], axis=0)      # [BT+R, QKV]

    mask_iaf = mask_iaf_ref[...]                              # [BT, BT+R] additive (block-diag
    mask_bid = mask_bid_ref[...]                              #  batch mask, causal for IAF heads)

    dn = (((1,), (1,)), ((), ()))                             # contract last dims: q @ k.T
    head_outs = []
    for h in range(NH):                                       # static unroll (NH = 4)
        sl = slice(h * HD, (h + 1) * HD)
        s = jax.lax.dot_general(qr[:, sl], k_all[:, sl], dn,
                                preferred_element_type=f32)   # [BT, BT+R]
        s = s + (mask_iaf if h < NIAF else mask_bid)
        m = jnp.max(s, axis=-1, keepdims=True)
        p = jnp.exp(s - m)
        inv = pl.reciprocal(jnp.sum(p, axis=-1, keepdims=True), approx=True)
        o = jnp.dot(p, v_all[:, sl], preferred_element_type=f32)             # [BT, HD]
        head_outs.append(o * inv)
    attn_out = jnp.concatenate(head_outs, axis=-1)            # [BT, QKV]

    # ---- mlp_proj : one fused matmul + GLU(silu) -------------------------------------------
    mlp_in = jnp.concatenate([x, z, attn_out], axis=-1).astype(bf16)         # [BT, H+Z+QKV]
    gm = jnp.dot(mlp_in, wmlp_ref[...], preferred_element_type=f32)          # [BT, 2*MLP]
    gate = gm[:, :MLP]
    val = gm[:, MLP:]
    mlp_out = gate * (1.0 / (1.0 + jnp.exp(-gate))) * val                    # silu(gate)*val

    # ---- down_proj : one fused matmul + ReZeroIO.exit ---------------------------------------
    down_in = jnp.concatenate([z, attn_out, mlp_out], axis=-1).astype(bf16)  # [BT, Z+QKV+MLP]
    down = jnp.dot(down_in, wdown_ref[...], preferred_element_type=f32)      # [BT, H]
    new_hs = hs + alpha_ref[...] * down

    # ---- single lane-dense (128-wide) packed output store -----------------------------------
    pad = jnp.zeros((BT, OUT_PAD - OUT_W), f32)
    out_ref[...] = jnp.concatenate([new_hs, z, mu, sigma, pad], axis=-1)     # [BT, 128]


# ----------------------------- wrapper -----------------------------------------------------
def _build_flat_masks(base_mask):
    """[B,T,T] additive base mask -> flat [BT, BT+R] masks for bid / IAF heads.

    Mirrors get_iaf_attn_mask (triu, diagonal=0, applied to the first NIAF heads) and adds the
    block-diagonal batch structure so the kernel can run attention on the flattened rows.
    Registers (last R columns) are never masked.
    """
    eye = (jnp.arange(B)[:, None] == jnp.arange(B)[None, :])[:, None, :, None]   # (B,1,B,1)
    big = jnp.where(eye, base_mask[:, :, None, :], NEG_INF).reshape(BT, BT)
    tri = jnp.where(jnp.arange(T)[None, :] >= jnp.arange(T)[:, None],
                    jnp.float32(NEG_INF), jnp.float32(0.0))                       # (T,T)
    causal = jnp.where(eye, tri[None, :, None, :], 0.0).reshape(BT, BT)
    reg = jnp.zeros((BT, R), jnp.float32)
    mask_bid = jnp.concatenate([big, reg], axis=-1)
    mask_iaf = jnp.concatenate([big + causal, reg], axis=-1)
    return mask_iaf, mask_bid


@jax.jit
def zlm_encoder_layer(hidden_states, noise, next_noise, base_attn_mask, params):
    hs2 = hidden_states.reshape(BT, H)
    n2 = noise.reshape(BT, Z)
    nn2 = next_noise.reshape(BT, Z)
    mask_iaf, mask_bid = _build_flat_masks(base_attn_mask)

    grid_spec = pltpu.PrefetchScalarGridSpec(
        num_scalar_prefetch=0,
        grid=(1,),                                          # single fused step
        in_specs=[
            pl.BlockSpec((BT, H), lambda i: (0, 0)),                    # hidden_states (flat)
            pl.BlockSpec((BT, Z), lambda i: (0, 0)),                    # noise (flat)
            pl.BlockSpec((BT, Z), lambda i: (0, 0)),                    # next_noise (flat)
            pl.BlockSpec((BT, KW), lambda i: (0, 0)),                   # IAF-head additive mask
            pl.BlockSpec((BT, KW), lambda i: (0, 0)),                   # bid-head additive mask
            pl.BlockSpec((1, H), lambda i: (0, 0)),                     # ln weight
            pl.BlockSpec((1, H), lambda i: (0, 0)),                     # ln bias
            pl.BlockSpec((1, 1), lambda i: (0, 0)),                     # ReZero alpha
            pl.BlockSpec((H, 2 * Z), lambda i: (0, 0)),                 # wz^T (bf16, scale folded)
            pl.BlockSpec((H + 2 * Z, 3 * QKV), lambda i: (0, 0)),       # wqkv^T (bf16, masked+scaled)
            pl.BlockSpec((R, QKV), lambda i: (0, 0)),                   # K registers
            pl.BlockSpec((R, QKV), lambda i: (0, 0)),                   # V registers
            pl.BlockSpec((BT, QKV), lambda i: (0, 0)),                  # rope cos (full width)
            pl.BlockSpec((BT, QKV), lambda i: (0, 0)),                  # rope -sin (1st half lanes)
            pl.BlockSpec((BT, QKV), lambda i: (0, 0)),                  # rope +sin (2nd half lanes)
            pl.BlockSpec((H + Z + QKV, 2 * MLP), lambda i: (0, 0)),     # wmlp^T (bf16)
            pl.BlockSpec((Z + QKV + MLP, H), lambda i: (0, 0)),         # wdown^T (bf16)
        ],
        out_specs=pl.BlockSpec((BT, OUT_PAD), lambda i: (0, 0)),
    )
    packed = pl.pallas_call(
        zlm_encoder_layer_kernel,
        out_shape=jax.ShapeDtypeStruct((BT, OUT_PAD), jnp.float32),
        grid_spec=grid_spec,
        compiler_params=pltpu.CompilerParams(dimension_semantics=("arbitrary",)),
    )(hs2, n2, nn2, mask_iaf, mask_bid,
      params["ln_w"], params["ln_b"], params["alpha"],
      params["wz_t"], params["wqkv_t"], params["k_regs"], params["v_regs"],
      params["rope_cos"], params["rope_sin_a"], params["rope_sin_b"],
      params["wmlp_t"], params["wdown_t"])

    packed = packed.reshape(B, T, OUT_PAD)
    new_hs = packed[..., :H]
    z = packed[..., H:H + Z]
    mu = packed[..., H + Z:H + 2 * Z]
    sigma = packed[..., H + 2 * Z:OUT_W]
    return new_hs, z, mu, sigma


# ----------------------------- parameter / table construction -------------------------------
def make_qkv_matrix_mask():
    # Mirrors ZLmEncoderLayer._get_qkv_matrix_mask (rows = 3*QKV outputs, cols = H + Z + Z).
    hidden_mask = np.ones((3 * QKV, H), np.float32)
    z_mask = np.ones((3 * QKV, Z), np.float32)
    noise_q = np.zeros((QKV, Z), np.float32)
    noise_iaf = np.ones((NIAF * HD, Z), np.float32)
    noise_bid = np.zeros((NBID * HD, Z), np.float32)
    noise_kv = np.concatenate([noise_iaf, noise_bid], axis=0)
    noise_kv = np.tile(noise_kv, (2, 1))
    noise_mask = np.concatenate([noise_q, noise_kv], axis=0)
    return np.concatenate([hidden_mask, z_mask, noise_mask], axis=1)


def make_rope_tables():
    # Per-head [T, HALF] angle tables (partial rotate-half RoPE).
    inv_freq = ROPE_BASE ** (-(np.arange(HALF, dtype=np.float32) * 2.0 / ROPE_DIM))
    ang = np.arange(T, dtype=np.float32)[:, None] * inv_freq[None, :]        # [T, HALF]
    cos_h, sin_h = np.cos(ang), np.sin(ang)
    ones_pad = np.ones((T, HD - ROPE_DIM), np.float32)
    zero_pad = np.zeros((T, HD - ROPE_DIM), np.float32)
    zero_half = np.zeros((T, HALF), np.float32)
    # Full-width per-head tables for the vectorized roll formulation.
    cos_head = np.concatenate([cos_h, cos_h, ones_pad], axis=1)              # [T, HD]
    sina_head = np.concatenate([-sin_h, zero_half, zero_pad], axis=1)        # pairs with roll(-HALF)
    sinb_head = np.concatenate([zero_half, sin_h, zero_pad], axis=1)         # pairs with roll(+HALF)

    def full(a):  # [T, HD] -> [B*T, QKV] (tile across heads, then across batch rows)
        return np.tile(np.tile(a, (1, NH)), (B, 1))

    return (jnp.asarray(full(cos_head)), jnp.asarray(full(sina_head)), jnp.asarray(full(sinb_head)),
            jnp.asarray(cos_h), jnp.asarray(sin_h))


def make_params(key):
    ks = jax.random.split(key, 6)
    scale = 0.05
    # Torch layout (out_features, in_features); stored transposed for x @ W.
    wz = scale * jax.random.normal(ks[0], (2 * Z, H), jnp.float32)
    wqkv = scale * jax.random.normal(ks[1], (3 * QKV, H + 2 * Z), jnp.float32)
    wmlp = scale * jax.random.normal(ks[2], (2 * MLP, H + Z + QKV), jnp.float32)
    wdown = scale * jax.random.normal(ks[3], (H, Z + QKV + MLP), jnp.float32)
    k_regs = scale * jax.random.normal(ks[4], (R, QKV), jnp.float32)
    v_regs = scale * jax.random.normal(ks[5], (R, QKV), jnp.float32)

    qkv_mask = jnp.asarray(make_qkv_matrix_mask())
    wz_t = (Z_SCALE * wz).T                                    # fold z_scale into the weight
    wqkv_t = (wqkv * qkv_mask).T
    wqkv_t = wqkv_t.at[:, :QKV].multiply(ATTN_SCALE)           # fold 1/sqrt(head_size) into Q

    cos_t, sin_a, sin_b, cos_head, sin_head = make_rope_tables()
    return {
        "ln_w": jnp.ones((1, H), jnp.float32),
        "ln_b": jnp.zeros((1, H), jnp.float32),
        # ReZero nominally initializes alpha=0; nonzero so the residual branch is exercised.
        "alpha": jnp.full((1, 1), 0.1, jnp.float32),
        "wz_t": wz_t.astype(jnp.bfloat16),
        "wqkv_t": wqkv_t.astype(jnp.bfloat16),
        "wmlp_t": wmlp.T.astype(jnp.bfloat16),
        "wdown_t": wdown.T.astype(jnp.bfloat16),
        "k_regs": k_regs, "v_regs": v_regs,
        "rope_cos": cos_t, "rope_sin_a": sin_a, "rope_sin_b": sin_b,
        "cos_head": cos_head, "sin_head": sin_head,            # reference-only tables
    }


# ----------------------------- pure-JAX reference (module-faithful structure) ----------------
def ref_single(hs, nse, nnse, bmask, p):
    mean = hs.mean(-1, keepdims=True)
    cent = hs - mean
    var = (cent * cent).mean(-1, keepdims=True)
    x = cent * jax.lax.rsqrt(var + EPS) * p["ln_w"][0] + p["ln_b"][0]

    zp = jnp.dot(x.astype(jnp.bfloat16), p["wz_t"], preferred_element_type=jnp.float32)
    mu, log_sigma = zp[:, :Z], zp[:, Z:]
    u = log_sigma + SOFTPLUS_SHIFT
    sigma = jnp.maximum(u, 0.0) + jnp.log(1.0 + jnp.exp(-jnp.abs(u)))
    z = mu + sigma * nse

    qkv_in = jnp.concatenate([x, z, nnse], axis=-1).astype(jnp.bfloat16)
    qkv = jnp.dot(qkv_in, p["wqkv_t"], preferred_element_type=jnp.float32)
    q, k, v = qkv[:, :QKV], qkv[:, QKV:2 * QKV], qkv[:, 2 * QKV:]

    cos, sin = p["cos_head"], p["sin_head"]

    def rope(xh):  # per-head slice-based rotate-half (independent of the kernel's roll form)
        x1, x2, xr = xh[:, :HALF], xh[:, HALF:ROPE_DIM], xh[:, ROPE_DIM:]
        return jnp.concatenate([x1 * cos - x2 * sin, x2 * cos + x1 * sin, xr], axis=-1)

    causal = jnp.where(jnp.arange(T)[None, :] >= jnp.arange(T)[:, None], NEG_INF, 0.0)
    hi = jax.lax.Precision.HIGHEST
    outs = []
    for h in range(NH):
        sl = slice(h * HD, (h + 1) * HD)
        qh, kh, vh = rope(q[:, sl]), rope(k[:, sl]), v[:, sl]
        kc = jnp.concatenate([kh, p["k_regs"][:, sl]], axis=0)
        vc = jnp.concatenate([vh, p["v_regs"][:, sl]], axis=0)
        s = jnp.dot(qh, kc.T, precision=hi)            # scale already folded into wqkv_t
        seq_mask = bmask + (causal if h < NIAF else 0.0)
        s = s + jnp.concatenate([seq_mask, jnp.zeros((T, R), jnp.float32)], axis=-1)
        m = s.max(-1, keepdims=True)
        pr = jnp.exp(s - m)
        outs.append(jnp.dot(pr, vc, precision=hi) / pr.sum(-1, keepdims=True))
    attn = jnp.concatenate(outs, axis=-1)

    mlp_in = jnp.concatenate([x, z, attn], axis=-1).astype(jnp.bfloat16)
    gm = jnp.dot(mlp_in, p["wmlp_t"], preferred_element_type=jnp.float32)
    gate, val = gm[:, :MLP], gm[:, MLP:]
    mlp_out = gate * (1.0 / (1.0 + jnp.exp(-gate))) * val

    down_in = jnp.concatenate([z, attn, mlp_out], axis=-1).astype(jnp.bfloat16)
    down = jnp.dot(down_in, p["wdown_t"], preferred_element_type=jnp.float32)
    return hs + p["alpha"][0, 0] * down, z, mu, sigma


# ----------------------------- main -----------------------------------------------------------
if __name__ == "__main__":
    key = jax.random.PRNGKey(0)
    k_hs, k_noise, k_nnoise, k_params = jax.random.split(key, 4)

    hidden_states = jax.random.normal(k_hs, (B, T, H), jnp.float32)
    noise = jax.random.normal(k_noise, (B, T, Z), jnp.float32)
    next_noise = jax.random.normal(k_nnoise, (B, T, Z), jnp.float32)
    base_mask = jnp.zeros((B, T, T), jnp.float32)   # additive base mask (pre get_iaf_attn_mask)
    params = make_params(k_params)

    out_hs, out_z, out_mu, out_sigma = jax.block_until_ready(
        zlm_encoder_layer(hidden_states, noise, next_noise, base_mask, params))

    ref_hs, ref_z, ref_mu, ref_sigma = jax.vmap(
        lambda h, n, nn, m: ref_single(h, n, nn, m, params))(
        hidden_states, noise, next_noise, base_mask)

    for got, ref in ((out_hs, ref_hs), (out_z, ref_z), (out_mu, ref_mu), (out_sigma, ref_sigma)):
        assert got.shape == ref.shape and got.dtype == ref.dtype
        np.testing.assert_allclose(np.asarray(got), np.asarray(ref), rtol=2e-2, atol=2e-2)

    print("KERNEL_OK")
</pallas_src>

<mosaic_0001>
module attributes {stable_mosaic.version = 11 : i64} {
  func.func @zlm_encoder_layer_kernel(%arg0: i32, %arg1: memref<16x64xf32, #tpu.memory_space<vmem>>, %arg2: memref<16x16xf32, #tpu.memory_space<vmem>>, %arg3: memref<16x16xf32, #tpu.memory_space<vmem>>, %arg4: memref<16x20xf32, #tpu.memory_space<vmem>>, %arg5: memref<16x20xf32, #tpu.memory_space<vmem>>, %arg6: memref<1x64xf32, #tpu.memory_space<vmem>>, %arg7: memref<1x64xf32, #tpu.memory_space<vmem>>, %arg8: memref<1x1xf32, #tpu.memory_space<vmem>>, %arg9: memref<64x32xbf16, #tpu.memory_space<vmem>>, %arg10: memref<96x192xbf16, #tpu.memory_space<vmem>>, %arg11: memref<4x64xf32, #tpu.memory_space<vmem>>, %arg12: memref<4x64xf32, #tpu.memory_space<vmem>>, %arg13: memref<16x64xf32, #tpu.memory_space<vmem>>, %arg14: memref<16x64xf32, #tpu.memory_space<vmem>>, %arg15: memref<16x64xf32, #tpu.memory_space<vmem>>, %arg16: memref<144x256xbf16, #tpu.memory_space<vmem>>, %arg17: memref<208x64xbf16, #tpu.memory_space<vmem>>, %arg18: memref<16x128xf32, #tpu.memory_space<vmem>>) attributes {dimension_semantics = [#tpu.dimension_semantics<arbitrary>], iteration_bounds = array<i64: 1>, scalar_prefetch = 0 : i64, scratch_operands = 0 : i64, tpu.core_type = #tpu.core_type<tc>, window_params = [{pipeline_mode = #tpu.pipeline_mode<synchronous>, transform_indices = @transform_0, window_bounds = array<i64: 16, 64>}, {pipeline_mode = #tpu.pipeline_mode<synchronous>, transform_indices = @transform_1, window_bounds = array<i64: 16, 16>}, {pipeline_mode = #tpu.pipeline_mode<synchronous>, transform_indices = @transform_2, window_bounds = array<i64: 16, 16>}, {pipeline_mode = #tpu.pipeline_mode<synchronous>, transform_indices = @transform_3, window_bounds = array<i64: 16, 20>}, {pipeline_mode = #tpu.pipeline_mode<synchronous>, transform_indices = @transform_4, window_bounds = array<i64: 16, 20>}, {pipeline_mode = #tpu.pipeline_mode<synchronous>, transform_indices = @transform_5, window_bounds = array<i64: 1, 64>}, {pipeline_mode = #tpu.pipeline_mode<synchronous>, transform_indices = @transform_6, window_bounds = array<i64: 1, 64>}, {pipeline_mode = #tpu.pipeline_mode<synchronous>, transform_indices = @transform_7, window_bounds = array<i64: 1, 1>}, {pipeline_mode = #tpu.pipeline_mode<synchronous>, transform_indices = @transform_8, window_bounds = array<i64: 64, 32>}, {pipeline_mode = #tpu.pipeline_mode<synchronous>, transform_indices = @transform_9, window_bounds = array<i64: 96, 192>}, {pipeline_mode = #tpu.pipeline_mode<synchronous>, transform_indices = @transform_10, window_bounds = array<i64: 4, 64>}, {pipeline_mode = #tpu.pipeline_mode<synchronous>, transform_indices = @transform_11, window_bounds = array<i64: 4, 64>}, {pipeline_mode = #tpu.pipeline_mode<synchronous>, transform_indices = @transform_12, window_bounds = array<i64: 16, 64>}, {pipeline_mode = #tpu.pipeline_mode<synchronous>, transform_indices = @transform_13, window_bounds = array<i64: 16, 64>}, {pipeline_mode = #tpu.pipeline_mode<synchronous>, transform_indices = @transform_14, window_bounds = array<i64: 16, 64>}, {pipeline_mode = #tpu.pipeline_mode<synchronous>, transform_indices = @transform_15, window_bounds = array<i64: 144, 256>}, {pipeline_mode = #tpu.pipeline_mode<synchronous>, transform_indices = @transform_16, window_bounds = array<i64: 208, 64>}, {pipeline_mode = #tpu.pipeline_mode<synchronous>, transform_indices = @transform_17, window_bounds = array<i64: 16, 128>}]} {
    %c0 = arith.constant 0 : index
    %c0_0 = arith.constant 0 : index
    %0 = vector.load %arg1[%c0, %c0_0] : memref<16x64xf32, #tpu.memory_space<vmem>>, vector<16x64xf32>
    %c0_1 = arith.constant 0 : index
    %c0_2 = arith.constant 0 : index
    %1 = vector.load %arg2[%c0_1, %c0_2] : memref<16x16xf32, #tpu.memory_space<vmem>>, vector<16x16xf32>
    %c0_3 = arith.constant 0 : index
    %c0_4 = arith.constant 0 : index
    %2 = vector.load %arg3[%c0_3, %c0_4] : memref<16x16xf32, #tpu.memory_space<vmem>>, vector<16x16xf32>
    %cst = arith.constant dense<0.000000e+00> : vector<16xf32>
    %3 = vector.multi_reduction <add>, %0, %cst [1] : vector<16x64xf32> to vector<16xf32>
    %4 = vector.shape_cast %3 : vector<16xf32> to vector<16x1xf32>
    %cst_5 = arith.constant 6.400000e+01 : f32
    %5 = vector.broadcast %cst_5 : f32 to vector<16x1xf32>
    %6 = arith.divf %4, %5 : vector<16x1xf32>
    %7 = vector.broadcast %6 : vector<16x1xf32> to vector<16x64xf32>
    %8 = arith.subf %0, %7 : vector<16x64xf32>
    %9 = arith.mulf %8, %8 : vector<16x64xf32>
    %cst_6 = arith.constant dense<0.000000e+00> : vector<16xf32>
    %10 = vector.multi_reduction <add>, %9, %cst_6 [1] : vector<16x64xf32> to vector<16xf32>
    %11 = vector.shape_cast %10 : vector<16xf32> to vector<16x1xf32>
    %cst_7 = arith.constant 6.400000e+01 : f32
    %12 = vector.broadcast %cst_7 : f32 to vector<16x1xf32>
    %13 = arith.divf %11, %12 : vector<16x1xf32>
    %cst_8 = arith.constant 9.99999974E-6 : f32
    %14 = vector.broadcast %cst_8 : f32 to vector<16x1xf32>
    %15 = arith.addf %13, %14 : vector<16x1xf32>
    %16 = math.rsqrt %15 : vector<16x1xf32>
    %17 = vector.broadcast %16 : vector<16x1xf32> to vector<16x64xf32>
    %18 = arith.mulf %8, %17 : vector<16x64xf32>
    %c0_9 = arith.constant 0 : index
    %c0_10 = arith.constant 0 : index
    %19 = vector.load %arg6[%c0_9, %c0_10] : memref<1x64xf32, #tpu.memory_space<vmem>>, vector<1x64xf32>
    %20 = vector.broadcast %19 : vector<1x64xf32> to vector<16x64xf32>
    %21 = arith.mulf %18, %20 : vector<16x64xf32>
    %c0_11 = arith.constant 0 : index
    %c0_12 = arith.constant 0 : index
    %22 = vector.load %arg7[%c0_11, %c0_12] : memref<1x64xf32, #tpu.memory_space<vmem>>, vector<1x64xf32>
    %23 = vector.broadcast %22 : vector<1x64xf32> to vector<16x64xf32>
    %24 = arith.addf %21, %23 : vector<16x64xf32>
    %25 = arith.truncf %24 : vector<16x64xf32> to vector<16x64xbf16>
    %c0_13 = arith.constant 0 : index
    %c0_14 = arith.constant 0 : index
    %26 = vector.load %arg9[%c0_13, %c0_14] : memref<64x32xbf16, #tpu.memory_space<vmem>>, vector<64x32xbf16>
    %cst_15 = arith.constant dense<0.000000e+00> : vector<16x32xf32>
    %27 = tpu.matmul %25, %26, %cst_15 {dimension_numbers = #tpu.dot_dimension_numbers<[1], [0], [0], [1], [0, 0, 1, 1], [], []>} : vector<16x64xbf16>, vector<64x32xbf16>, vector<16x32xf32> -> vector<16x32xf32>
    %28 = vector.extract_strided_slice %27 {offsets = [0, 0], sizes = [16, 16], strides = [1, 1]} : vector<16x32xf32> to vector<16x16xf32>
    %29 = vector.extract_strided_slice %27 {offsets = [0, 16], sizes = [16, 16], strides = [1, 1]} : vector<16x32xf32> to vector<16x16xf32>
    %cst_16 = arith.constant 0.541324854 : f32
    %30 = vector.broadcast %cst_16 : f32 to vector<16x16xf32>
    %31 = arith.addf %29, %30 : vector<16x16xf32>
    %cst_17 = arith.constant 0.000000e+00 : f32
    %32 = vector.broadcast %cst_17 : f32 to vector<16x16xf32>
    %33 = arith.maximumf %31, %32 : vector<16x16xf32>
    %34 = math.absf %31 : vector<16x16xf32>
    %cst_18 = arith.constant 0.000000e+00 : f32
    %35 = vector.broadcast %cst_18 : f32 to vector<16x16xf32>
    %36 = arith.subf %35, %34 : vector<16x16xf32>
    %37 = math.exp %36 : vector<16x16xf32>
    %cst_19 = arith.constant 1.000000e+00 : f32
    %38 = vector.broadcast %cst_19 : f32 to vector<16x16xf32>
    %39 = arith.addf %38, %37 : vector<16x16xf32>
    %40 = math.log %39 : vector<16x16xf32>
    %41 = arith.addf %33, %40 : vector<16x16xf32>
    %42 = arith.mulf %41, %1 : vector<16x16xf32>
    %43 = arith.addf %28, %42 : vector<16x16xf32>
    %44 = tpu.concatenate %24, %43, %2 in 1 : vector<16x64xf32>, vector<16x16xf32>, vector<16x16xf32> -> vector<16x96xf32>
    %45 = arith.truncf %44 : vector<16x96xf32> to vector<16x96xbf16>
    %c0_20 = arith.constant 0 : index
    %c0_21 = arith.constant 0 : index
    %46 = vector.load %arg10[%c0_20, %c0_21] : memref<96x192xbf16, #tpu.memory_space<vmem>>, vector<96x192xbf16>
    %cst_22 = arith.constant dense<0.000000e+00> : vector<16x192xf32>
    %47 = tpu.matmul %45, %46, %cst_22 {dimension_numbers = #tpu.dot_dimension_numbers<[1], [0], [0], [1], [0, 0, 1, 1], [], []>} : vector<16x96xbf16>, vector<96x192xbf16>, vector<16x192xf32> -> vector<16x192xf32>
    %48 = vector.extract_strided_slice %47 {offsets = [0, 0], sizes = [16, 64], strides = [1, 1]} : vector<16x192xf32> to vector<16x64xf32>
    %49 = vector.extract_strided_slice %47 {offsets = [0, 64], sizes = [16, 64], strides = [1, 1]} : vector<16x192xf32> to vector<16x64xf32>
    %50 = vector.extract_strided_slice %47 {offsets = [0, 128], sizes = [16, 64], strides = [1, 1]} : vector<16x192xf32> to vector<16x64xf32>
    %c0_23 = arith.constant 0 : index
    %c0_24 = arith.constant 0 : index
    %51 = vector.load %arg13[%c0_23, %c0_24] : memref<16x64xf32, #tpu.memory_space<vmem>>, vector<16x64xf32>
    %c0_25 = arith.constant 0 : index
    %c0_26 = arith.constant 0 : index
    %52 = vector.load %arg14[%c0_25, %c0_26] : memref<16x64xf32, #tpu.memory_space<vmem>>, vector<16x64xf32>
    %c0_27 = arith.constant 0 : index
    %c0_28 = arith.constant 0 : index
    %53 = vector.load %arg15[%c0_27, %c0_28] : memref<16x64xf32, #tpu.memory_space<vmem>>, vector<16x64xf32>
    %54 = arith.mulf %48, %51 : vector<16x64xf32>
    %55 = vector.extract_strided_slice %48 {offsets = [0, 4], sizes = [16, 60], strides = [1, 1]} : vector<16x64xf32> to vector<16x60xf32>
    %56 = vector.extract_strided_slice %48 {offsets = [0, 0], sizes = [16, 4], strides = [1, 1]} : vector<16x64xf32> to vector<16x4xf32>
    %57 = tpu.concatenate %55, %56 in 1 : vector<16x60xf32>, vector<16x4xf32> -> vector<16x64xf32>
    %58 = arith.mulf %57, %52 : vector<16x64xf32>
    %59 = arith.addf %54, %58 : vector<16x64xf32>
    %60 = vector.extract_strided_slice %48 {offsets = [0, 60], sizes = [16, 4], strides = [1, 1]} : vector<16x64xf32> to vector<16x4xf32>
    %61 = vector.extract_strided_slice %48 {offsets = [0, 0], sizes = [16, 60], strides = [1, 1]} : vector<16x64xf32> to vector<16x60xf32>
    %62 = tpu.concatenate %60, %61 in 1 : vector<16x4xf32>, vector<16x60xf32> -> vector<16x64xf32>
    %63 = arith.mulf %62, %53 : vector<16x64xf32>
    %64 = arith.addf %59, %63 : vector<16x64xf32>
    %65 = arith.mulf %49, %51 : vector<16x64xf32>
    %66 = vector.extract_strided_slice %49 {offsets = [0, 4], sizes = [16, 60], strides = [1, 1]} : vector<16x64xf32> to vector<16x60xf32>
    %67 = vector.extract_strided_slice %49 {offsets = [0, 0], sizes = [16, 4], strides = [1, 1]} : vector<16x64xf32> to vector<16x4xf32>
    %68 = tpu.concatenate %66, %67 in 1 : vector<16x60xf32>, vector<16x4xf32> -> vector<16x64xf32>
    %69 = arith.mulf %68, %52 : vector<16x64xf32>
    %70 = arith.addf %65, %69 : vector<16x64xf32>
    %71 = vector.extract_strided_slice %49 {offsets = [0, 60], sizes = [16, 4], strides = [1, 1]} : vector<16x64xf32> to vector<16x4xf32>
    %72 = vector.extract_strided_slice %49 {offsets = [0, 0], sizes = [16, 60], strides = [1, 1]} : vector<16x64xf32> to vector<16x60xf32>
    %73 = tpu.concatenate %71, %72 in 1 : vector<16x4xf32>, vector<16x60xf32> -> vector<16x64xf32>
    %74 = arith.mulf %73, %53 : vector<16x64xf32>
    %75 = arith.addf %70, %74 : vector<16x64xf32>
    %c0_29 = arith.constant 0 : index
    %c0_30 = arith.constant 0 : index
    %76 = vector.load %arg11[%c0_29, %c0_30] : memref<4x64xf32, #tpu.memory_space<vmem>>, vector<4x64xf32>
    %77 = tpu.concatenate %75, %76 in 0 : vector<16x64xf32>, vector<4x64xf32> -> vector<20x64xf32>
    %c0_31 = arith.constant 0 : index
    %c0_32 = arith.constant 0 : index
    %78 = vector.load %arg12[%c0_31, %c0_32] : memref<4x64xf32, #tpu.memory_space<vmem>>, vector<4x64xf32>
    %79 = tpu.concatenate %50, %78 in 0 : vector<16x64xf32>, vector<4x64xf32> -> vector<20x64xf32>
    %c0_33 = arith.constant 0 : index
    %c0_34 = arith.constant 0 : index
    %80 = vector.load %arg4[%c0_33, %c0_34] : memref<16x20xf32, #tpu.memory_space<vmem>>, vector<16x20xf32>
    %c0_35 = arith.constant 0 : index
    %c0_36 = arith.constant 0 : index
    %81 = vector.load %arg5[%c0_35, %c0_36] : memref<16x20xf32, #tpu.memory_space<vmem>>, vector<16x20xf32>
    %82 = vector.extract_strided_slice %64 {offsets = [0, 0], sizes = [16, 16], strides = [1, 1]} : vector<16x64xf32> to vector<16x16xf32>
    %83 = vector.extract_strided_slice %77 {offsets = [0, 0], sizes = [20, 16], strides = [1, 1]} : vector<20x64xf32> to vector<20x16xf32>
    %cst_37 = arith.constant dense<0.000000e+00> : vector<16x20xf32>
    %84 = tpu.matmul %82, %83, %cst_37 {dimension_numbers = #tpu.dot_dimension_numbers<[1], [1], [0], [0], [0, 0, 1, 0], [], []>} : vector<16x16xf32>, vector<20x16xf32>, vector<16x20xf32> -> vector<16x20xf32>
    %85 = arith.addf %84, %80 : vector<16x20xf32>
    %cst_38 = arith.constant dense<0xFF800000> : vector<16xf32>
    %86 = vector.multi_reduction <maximumf>, %85, %cst_38 [1] : vector<16x20xf32> to vector<16xf32>
    %87 = vector.shape_cast %86 : vector<16xf32> to vector<16x1xf32>
    %88 = vector.broadcast %87 : vector<16x1xf32> to vector<16x20xf32>
    %89 = arith.subf %85, %88 : vector<16x20xf32>
    %90 = math.exp %89 : vector<16x20xf32>
    %cst_39 = arith.constant dense<0.000000e+00> : vector<16xf32>
    %91 = vector.multi_reduction <add>, %90, %cst_39 [1] : vector<16x20xf32> to vector<16xf32>
    %92 = vector.shape_cast %91 : vector<16xf32> to vector<16x1xf32>
    %93 = tpu.reciprocal %92 {approx = true} : vector<16x1xf32> -> vector<16x1xf32>
    %94 = vector.extract_strided_slice %79 {offsets = [0, 0], sizes = [20, 16], strides = [1, 1]} : vector<20x64xf32> to vector<20x16xf32>
    %cst_40 = arith.constant dense<0.000000e+00> : vector<16x16xf32>
    %95 = tpu.matmul %90, %94, %cst_40 {dimension_numbers = #tpu.dot_dimension_numbers<[1], [0], [0], [1], [0, 0, 1, 1], [], []>} : vector<16x20xf32>, vector<20x16xf32>, vector<16x16xf32> -> vector<16x16xf32>
    %96 = vector.broadcast %93 : vector<16x1xf32> to vector<16x16xf32>
    %97 = arith.mulf %95, %96 : vector<16x16xf32>
    %98 = vector.extract_strided_slice %64 {offsets = [0, 16], sizes = [16, 16], strides = [1, 1]} : vector<16x64xf32> to vector<16x16xf32>
    %99 = vector.extract_strided_slice %77 {offsets = [0, 16], sizes = [20, 16], strides = [1, 1]} : vector<20x64xf32> to vector<20x16xf32>
    %cst_41 = arith.constant dense<0.000000e+00> : vector<16x20xf32>
    %100 = tpu.matmul %98, %99, %cst_41 {dimension_numbers = #tpu.dot_dimension_numbers<[1], [1], [0], [0], [0, 0, 1, 0], [], []>} : vector<16x16xf32>, vector<20x16xf32>, vector<16x20xf32> -> vector<16x20xf32>
    %101 = arith.addf %100, %80 : vector<16x20xf32>
    %cst_42 = arith.constant dense<0xFF800000> : vector<16xf32>
    %102 = vector.multi_reduction <maximumf>, %101, %cst_42 [1] : vector<16x20xf32> to vector<16xf32>
    %103 = vector.shape_cast %102 : vector<16xf32> to vector<16x1xf32>
    %104 = vector.broadcast %103 : vector<16x1xf32> to vector<16x20xf32>
    %105 = arith.subf %101, %104 : vector<16x20xf32>
    %106 = math.exp %105 : vector<16x20xf32>
    %cst_43 = arith.constant dense<0.000000e+00> : vector<16xf32>
    %107 = vector.multi_reduction <add>, %106, %cst_43 [1] : vector<16x20xf32> to vector<16xf32>
    %108 = vector.shape_cast %107 : vector<16xf32> to vector<16x1xf32>
    %109 = tpu.reciprocal %108 {approx = true} : vector<16x1xf32> -> vector<16x1xf32>
    %110 = vector.extract_strided_slice %79 {offsets = [0, 16], sizes = [20, 16], strides = [1, 1]} : vector<20x64xf32> to vector<20x16xf32>
    %cst_44 = arith.constant dense<0.000000e+00> : vector<16x16xf32>
    %111 = tpu.matmul %106, %110, %cst_44 {dimension_numbers = #tpu.dot_dimension_numbers<[1], [0], [0], [1], [0, 0, 1, 1], [], []>} : vector<16x20xf32>, vector<20x16xf32>, vector<16x16xf32> -> vector<16x16xf32>
    %112 = vector.broadcast %109 : vector<16x1xf32> to vector<16x16xf32>
    %113 = arith.mulf %111, %112 : vector<16x16xf32>
    %114 = vector.extract_strided_slice %64 {offsets = [0, 32], sizes = [16, 16], strides = [1, 1]} : vector<16x64xf32> to vector<16x16xf32>
    %115 = vector.extract_strided_slice %77 {offsets = [0, 32], sizes = [20, 16], strides = [1, 1]} : vector<20x64xf32> to vector<20x16xf32>
    %cst_45 = arith.constant dense<0.000000e+00> : vector<16x20xf32>
    %116 = tpu.matmul %114, %115, %cst_45 {dimension_numbers = #tpu.dot_dimension_numbers<[1], [1], [0], [0], [0, 0, 1, 0], [], []>} : vector<16x16xf32>, vector<20x16xf32>, vector<16x20xf32> -> vector<16x20xf32>
    %117 = arith.addf %116, %81 : vector<16x20xf32>
    %cst_46 = arith.constant dense<0xFF800000> : vector<16xf32>
    %118 = vector.multi_reduction <maximumf>, %117, %cst_46 [1] : vector<16x20xf32> to vector<16xf32>
    %119 = vector.shape_cast %118 : vector<16xf32> to vector<16x1xf32>
    %120 = vector.broadcast %119 : vector<16x1xf32> to vector<16x20xf32>
    %121 = arith.subf %117, %120 : vector<16x20xf32>
    %122 = math.exp %121 : vector<16x20xf32>
    %cst_47 = arith.constant dense<0.000000e+00> : vector<16xf32>
    %123 = vector.multi_reduction <add>, %122, %cst_47 [1] : vector<16x20xf32> to vector<16xf32>
    %124 = vector.shape_cast %123 : vector<16xf32> to vector<16x1xf32>
    %125 = tpu.reciprocal %124 {approx = true} : vector<16x1xf32> -> vector<16x1xf32>
    %126 = vector.extract_strided_slice %79 {offsets = [0, 32], sizes = [20, 16], strides = [1, 1]} : vector<20x64xf32> to vector<20x16xf32>
    %cst_48 = arith.constant dense<0.000000e+00> : vector<16x16xf32>
    %127 = tpu.matmul %122, %126, %cst_48 {dimension_numbers = #tpu.dot_dimension_numbers<[1], [0], [0], [1], [0, 0, 1, 1], [], []>} : vector<16x20xf32>, vector<20x16xf32>, vector<16x16xf32> -> vector<16x16xf32>
    %128 = vector.broadcast %125 : vector<16x1xf32> to vector<16x16xf32>
    %129 = arith.mulf %127, %128 : vector<16x16xf32>
    %130 = vector.extract_strided_slice %64 {offsets = [0, 48], sizes = [16, 16], strides = [1, 1]} : vector<16x64xf32> to vector<16x16xf32>
    %131 = vector.extract_strided_slice %77 {offsets = [0, 48], sizes = [20, 16], strides = [1, 1]} : vector<20x64xf32> to vector<20x16xf32>
    %cst_49 = arith.constant dense<0.000000e+00> : vector<16x20xf32>
    %132 = tpu.matmul %130, %131, %cst_49 {dimension_numbers = #tpu.dot_dimension_numbers<[1], [1], [0], [0], [0, 0, 1, 0], [], []>} : vector<16x16xf32>, vector<20x16xf32>, vector<16x20xf32> -> vector<16x20xf32>
    %133 = arith.addf %132, %81 : vector<16x20xf32>
    %cst_50 = arith.constant dense<0xFF800000> : vector<16xf32>
    %134 = vector.multi_reduction <maximumf>, %133, %cst_50 [1] : vector<16x20xf32> to vector<16xf32>
    %135 = vector.shape_cast %134 : vector<16xf32> to vector<16x1xf32>
    %136 = vector.broadcast %135 : vector<16x1xf32> to vector<16x20xf32>
    %137 = arith.subf %133, %136 : vector<16x20xf32>
    %138 = math.exp %137 : vector<16x20xf32>
    %cst_51 = arith.constant dense<0.000000e+00> : vector<16xf32>
    %139 = vector.multi_reduction <add>, %138, %cst_51 [1] : vector<16x20xf32> to vector<16xf32>
    %140 = vector.shape_cast %139 : vector<16xf32> to vector<16x1xf32>
    %141 = tpu.reciprocal %140 {approx = true} : vector<16x1xf32> -> vector<16x1xf32>
    %142 = vector.extract_strided_slice %79 {offsets = [0, 48], sizes = [20, 16], strides = [1, 1]} : vector<20x64xf32> to vector<20x16xf32>
    %cst_52 = arith.constant dense<0.000000e+00> : vector<16x16xf32>
    %143 = tpu.matmul %138, %142, %cst_52 {dimension_numbers = #tpu.dot_dimension_numbers<[1], [0], [0], [1], [0, 0, 1, 1], [], []>} : vector<16x20xf32>, vector<20x16xf32>, vector<16x16xf32> -> vector<16x16xf32>
    %144 = vector.broadcast %141 : vector<16x1xf32> to vector<16x16xf32>
    %145 = arith.mulf %143, %144 : vector<16x16xf32>
    %146 = tpu.concatenate %97, %113, %129, %145 in 1 : vector<16x16xf32>, vector<16x16xf32>, vector<16x16xf32>, vector<16x16xf32> -> vector<16x64xf32>
    %147 = tpu.concatenate %24, %43, %146 in 1 : vector<16x64xf32>, vector<16x16xf32>, vector<16x64xf32> -> vector<16x144xf32>
    %148 = arith.truncf %147 : vector<16x144xf32> to vector<16x144xbf16>
    %c0_53 = arith.constant 0 : index
    %c0_54 = arith.constant 0 : index
    %149 = vector.load %arg16[%c0_53, %c0_54] : memref<144x256xbf16, #tpu.memory_space<vmem>>, vector<144x256xbf16>
    %cst_55 = arith.constant dense<0.000000e+00> : vector<16x256xf32>
    %150 = tpu.matmul %148, %149, %cst_55 {dimension_numbers = #tpu.dot_dimension_numbers<[1], [0], [0], [1], [0, 0, 1, 1], [], []>} : vector<16x144xbf16>, vector<144x256xbf16>, vector<16x256xf32> -> vector<16x256xf32>
    %151 = vector.extract_strided_slice %150 {offsets = [0, 0], sizes = [16, 128], strides = [1, 1]} : vector<16x256xf32> to vector<16x128xf32>
    %152 = vector.extract_strided_slice %150 {offsets = [0, 128], sizes = [16, 128], strides = [1, 1]} : vector<16x256xf32> to vector<16x128xf32>
    %cst_56 = arith.constant 0.000000e+00 : f32
    %153 = vector.broadcast %cst_56 : f32 to vector<16x128xf32>
    %154 = arith.subf %153, %151 : vector<16x128xf32>
    %155 = math.exp %154 : vector<16x128xf32>
    %cst_57 = arith.constant 1.000000e+00 : f32
    %156 = vector.broadcast %cst_57 : f32 to vector<16x128xf32>
    %157 = arith.addf %156, %155 : vector<16x128xf32>
    %cst_58 = arith.constant 1.000000e+00 : f32
    %158 = vector.broadcast %cst_58 : f32 to vector<16x128xf32>
    %159 = arith.divf %158, %157 : vector<16x128xf32>
    %160 = arith.mulf %151, %159 : vector<16x128xf32>
    %161 = arith.mulf %160, %152 : vector<16x128xf32>
    %162 = tpu.concatenate %43, %146, %161 in 1 : vector<16x16xf32>, vector<16x64xf32>, vector<16x128xf32> -> vector<16x208xf32>
    %163 = arith.truncf %162 : vector<16x208xf32> to vector<16x208xbf16>
    %c0_59 = arith.constant 0 : index
    %c0_60 = arith.constant 0 : index
    %164 = vector.load %arg17[%c0_59, %c0_60] : memref<208x64xbf16, #tpu.memory_space<vmem>>, vector<208x64xbf16>
    %cst_61 = arith.constant dense<0.000000e+00> : vector<16x64xf32>
    %165 = tpu.matmul %163, %164, %cst_61 {dimension_numbers = #tpu.dot_dimension_numbers<[1], [0], [0], [1], [0, 0, 1, 1], [], []>} : vector<16x208xbf16>, vector<208x64xbf16>, vector<16x64xf32> -> vector<16x64xf32>
    %c0_62 = arith.constant 0 : index
    %c0_63 = arith.constant 0 : index
    %166 = vector.load %arg8[%c0_62, %c0_63] : memref<1x1xf32, #tpu.memory_space<vmem>>, vector<1x1xf32>
    %167 = vector.broadcast %166 : vector<1x1xf32> to vector<16x64xf32>
    %168 = arith.mulf %167, %165 : vector<16x64xf32>
    %169 = arith.addf %0, %168 : vector<16x64xf32>
    %cst_64 = arith.constant 0.000000e+00 : f32
    %170 = vector.broadcast %cst_64 : f32 to vector<16x16xf32>
    %171 = tpu.concatenate %169, %43, %28, %41, %170 in 1 : vector<16x64xf32>, vector<16x16xf32>, vector<16x16xf32>, vector<16x16xf32>, vector<16x16xf32> -> vector<16x128xf32>
    %c0_65 = arith.constant 0 : index
    %c0_66 = arith.constant 0 : index
    %172 = vector.load %arg18[%c0_65, %c0_66] : memref<16x128xf32, #tpu.memory_space<vmem>>, vector<16x128xf32>
    tpu.vector_store %arg18[%c0_65, %c0_66], %171 {strides = array<i32>} : memref<16x128xf32, #tpu.memory_space<vmem>>, vector<16x128xf32>,
    return
  }
  func.func @transform_0(%arg0: i32) -> (i32, i32) {
    %c0_i32 = arith.constant 0 : i32
    %c0_i32_0 = arith.constant 0 : i32
    %c0_i32_1 = arith.constant 0 : i32
    return %c0_i32, %c0_i32_0 : i32, i32
  }
  func.func @transform_1(%arg0: i32) -> (i32, i32) {
    %c0_i32 = arith.constant 0 : i32
    %c0_i32_0 = arith.constant 0 : i32
    %c0_i32_1 = arith.constant 0 : i32
    return %c0_i32, %c0_i32_0 : i32, i32
  }
  func.func @transform_2(%arg0: i32) -> (i32, i32) {
    %c0_i32 = arith.constant 0 : i32
    %c0_i32_0 = arith.constant 0 : i32
    %c0_i32_1 = arith.constant 0 : i32
    return %c0_i32, %c0_i32_0 : i32, i32
  }
  func.func @transform_3(%arg0: i32) -> (i32, i32) {
    %c0_i32 = arith.constant 0 : i32
    %c0_i32_0 = arith.constant 0 : i32
    %c0_i32_1 = arith.constant 0 : i32
    return %c0_i32, %c0_i32_0 : i32, i32
  }
  func.func @transform_4(%arg0: i32) -> (i32, i32) {
    %c0_i32 = arith.constant 0 : i32
    %c0_i32_0 = arith.constant 0 : i32
    %c0_i32_1 = arith.constant 0 : i32
    return %c0_i32, %c0_i32_0 : i32, i32
  }
  func.func @transform_5(%arg0: i32) -> (i32, i32) {
    %c0_i32 = arith.constant 0 : i32
    %c0_i32_0 = arith.constant 0 : i32
    %c0_i32_1 = arith.constant 0 : i32
    return %c0_i32, %c0_i32_0 : i32, i32
  }
  func.func @transform_6(%arg0: i32) -> (i32, i32) {
    %c0_i32 = arith.constant 0 : i32
    %c0_i32_0 = arith.constant 0 : i32
    %c0_i32_1 = arith.constant 0 : i32
    return %c0_i32, %c0_i32_0 : i32, i32
  }
  func.func @transform_7(%arg0: i32) -> (i32, i32) {
    %c0_i32 = arith.constant 0 : i32
    %c0_i32_0 = arith.constant 0 : i32
    %c0_i32_1 = arith.constant 0 : i32
    return %c0_i32, %c0_i32_0 : i32, i32
  }
  func.func @transform_8(%arg0: i32) -> (i32, i32) {
    %c0_i32 = arith.constant 0 : i32
    %c0_i32_0 = arith.constant 0 : i32
    %c0_i32_1 = arith.constant 0 : i32
    return %c0_i32, %c0_i32_0 : i32, i32
  }
  func.func @transform_9(%arg0: i32) -> (i32, i32) {
    %c0_i32 = arith.constant 0 : i32
    %c0_i32_0 = arith.constant 0 : i32
    %c0_i32_1 = arith.constant 0 : i32
    return %c0_i32, %c0_i32_0 : i32, i32
  }
  func.func @transform_10(%arg0: i32) -> (i32, i32) {
    %c0_i32 = arith.constant 0 : i32
    %c0_i32_0 = arith.constant 0 : i32
    %c0_i32_1 = arith.constant 0 : i32
    return %c0_i32, %c0_i32_0 : i32, i32
  }
  func.func @transform_11(%arg0: i32) -> (i32, i32) {
    %c0_i32 = arith.constant 0 : i32
    %c0_i32_0 = arith.constant 0 : i32
    %c0_i32_1 = arith.constant 0 : i32
    return %c0_i32, %c0_i32_0 : i32, i32
  }
  func.func @transform_12(%arg0: i32) -> (i32, i32) {
    %c0_i32 = arith.constant 0 : i32
    %c0_i32_0 = arith.constant 0 : i32
    %c0_i32_1 = arith.constant 0 : i32
    return %c0_i32, %c0_i32_0 : i32, i32
  }
  func.func @transform_13(%arg0: i32) -> (i32, i32) {
    %c0_i32 = arith.constant 0 : i32
    %c0_i32_0 = arith.constant 0 : i32
    %c0_i32_1 = arith.constant 0 : i32
    return %c0_i32, %c0_i32_0 : i32, i32
  }
  func.func @transform_14(%arg0: i32) -> (i32, i32) {
    %c0_i32 = arith.constant 0 : i32
    %c0_i32_0 = arith.constant 0 : i32
    %c0_i32_1 = arith.constant 0 : i32
    return %c0_i32, %c0_i32_0 : i32, i32
  }
  func.func @transform_15(%arg0: i32) -> (i32, i32) {
    %c0_i32 = arith.constant 0 : i32
    %c0_i32_0 = arith.constant 0 : i32
    %c0_i32_1 = arith.constant 0 : i32
    return %c0_i32, %c0_i32_0 : i32, i32
  }
  func.func @transform_16(%arg0: i32) -> (i32, i32) {
    %c0_i32 = arith.constant 0 : i32
    %c0_i32_0 = arith.constant 0 : i32
    %c0_i32_1 = arith.constant 0 : i32
    return %c0_i32, %c0_i32_0 : i32, i32
  }
  func.func @transform_17(%arg0: i32) -> (i32, i32) {
    %c0_i32 = arith.constant 0 : i32
    %c0_i32_0 = arith.constant 0 : i32
    %c0_i32_1 = arith.constant 0 : i32
    return %c0_i32, %c0_i32_0 : i32, i32
  }
}

</mosaic_0001>

<bundles_post_ra>
// kernel: zlm_encoder_layer.1
= control target key start
LH: loop header
LB: loop body
LE: loop exit
PB: predicated region body
PF: predicated region fallthrough
CT: control target
= control target key end

     0   :  { %vm65_vm0 = vcmask 523264   ;;  %v2177_v15 = vmov 0.0   ;;  %vm2178_vm1 = vmmov 0   ;;  %s2179_s28 = smov 16   ;;  %s2180_s25 = smov 112   ;;  %vm246_vm2 = vcmask 654336   ;;  %s2788_s0 = inlined_call_operand.vmem [shape: f32[16,64], index: 0, kind: input, shape index: {}]   ;;  %s2789_s8 = inlined_call_operand.vmem [shape: bf16[64,32], index: 8, kind: input, shape index: {}]   ;;  %s2790_s1 = inlined_call_operand.vmem [shape: f32[16,16], index: 1, kind: input, shape index: {}]   ;;  %s2791_s5 = inlined_call_operand.vmem [shape: f32[1,64], index: 5, kind: input, shape index: {}]   ;;  %s2792_s6 = inlined_call_operand.vmem [shape: f32[1,64], index: 6, kind: input, shape index: {}]   ;;  %s2793_s9 = inlined_call_operand.vmem [shape: bf16[96,192], index: 9, kind: input, shape index: {}]   ;;  %s2794_s2 = inlined_call_operand.vmem [shape: f32[16,16], index: 2, kind: input, shape index: {}]   ;;  %s2795_s12 = inlined_call_operand.vmem [shape: f32[16,64], index: 12, kind: input, shape index: {}]   ;;  %s2796_s13 = inlined_call_operand.vmem [shape: f32[16,64], index: 13, kind: input, shape index: {}]   ;;  %s2797_s14 = inlined_call_operand.vmem [shape: f32[16,64], index: 14, kind: input, shape index: {}]   ;;  %s2798_s10 = inlined_call_operand.vmem [shape: f32[4,64], index: 10, kind: input, shape index: {}]   ;;  %s2799_s3 = inlined_call_operand.vmem [shape: f32[16,20], index: 3, kind: input, shape index: {}]   ;;  %s2800_s11 = inlined_call_operand.vmem [shape: f32[4,64], index: 11, kind: input, shape index: {}]   ;;  %s2801_s4 = inlined_call_operand.vmem [shape: f32[16,20], index: 4, kind: input, shape index: {}]   ;;  %s2802_s7 = inlined_call_operand.<no memory space> [shape: f32[1,1], index: 7, kind: input, shape index: {}]   ;;  %s2803_s15 = inlined_call_operand.vmem [shape: bf16[144,256], index: 15, kind: input, shape index: {}]   ;;  %s2804_s16 = inlined_call_operand.vmem [shape: bf16[208,64], index: 16, kind: input, shape index: {}]   ;;  %s2805_s17 = inlined_call_operand.vmem [shape: f32[16,128], index: 17, kind: output, shape index: {}]  }
   0x1   :  { %2808 = sst [smem:[#allocation3_spill]] %s2788_s0  ;;  %1852 = vmatprep.subr.bf16.mxu0 %v2177_v15  ;;  %1860 = vmatprep.mubr.msk.bf16.mxu0 %vm2178_vm1, %v2177_v15  ;;  %v61_v19 = vld [vmem:[%s2790_s1] sm:$0xff]  ;;  %v62_v20 = vld [vmem:[%s2790_s1 + $0x8] sm:$0xff]  ;;  %s2183_s1 = smov 80   ;;  %vm322_vm3 = vcmask 785408   ;;  %vm391_vm4 = vcmask 490496  }
   0x2   :  { %2809 = sst [smem:[#allocation4_spill]] %s2789_s8  ;;  %s2810_s26 = sld [smem:[#allocation3_spill]]  ;;  %v1721_v29 = vld [vmem:[%s2791_s5] ss:$0 sm:$0xff]  ;;  %v2065_v57 = vld [vmem:[%s2793_s9 + $0x4] ss:$8 sps:$4 sm:$0xff]  }
   0x3   :  { %s2811_s30 = sld [smem:[#allocation4_spill]]  ;;  %v1722_v33 = vld [vmem:[%s2792_s6] ss:$0 sm:$0xff]  ;;  %326 = vmatprep.subr.bf16.mxu1 %v2065_v57  ;;  %s2184_s18 = smov 124   ;;  %vm410_vm5 = vcmask 31744   ;;  %vm472_vm6 = vcmask 130048  }
   0x4   :  { %v2067_v60 = vld [vmem:[%s2793_s9] ss:$8 sps:$4 sm:$0xff]   ;;  %s2185_s19 = smov 60   ;;  %s2187_s8 = smov 4   ;;  %vm2484_vm7 = vmpackc.low %vm472_vm6, %vm472_vm6  ;;  %vm560_vm8 = vcmask 162816   ;;  %vm587_vm9 = vcmask 1043456  }
   0x5   :  { %327 = vmatpush1.bf16.msra.mxu1 %v2067_v60  ;;  %vm1320_vm10 = vcmask 261120   ;;  %vm1323_vm11 = vcmask 392192   ;;  %vm1712_vm12 = vcmask 916480  }
   0x8   :  { %v59_v0 = vld [vmem:[%s2810_s26] sm:$0xff]  ;;  %v60_v1 = vld [vmem:[%s2810_s26 + $0x8] sm:$0xff] }
   0x9   :  { %v66_v2 = vsel %vm65_vm0, %v59_v0, 0.0  ;;  %v69_v3 = vsel %vm65_vm0, %v60_v1, 0.0  ;;  %v2061_v14 = vld [vmem:[%s2811_s30] sm:$0xff]   ;;  %v2062_v16 = vld [vmem:[%s2811_s30 + $0x8] sm:$0xff]   ;;  %v2063_v17 = vld [vmem:[%s2811_s30 + $0x10] sm:$0xff]  }
   0xa   :  { %67 = vadd.xlane.f32.xlu0 %v66_v2  ;;  %1853 = vmatpush3.bf16.msra.mxu0 %v2061_v14  ;;  %v2064_v18 = vld [vmem:[%s2811_s30 + $0x18] sm:$0xff]   ;;  %v2181_v14 = vmov 0  }
   0xb   :  { %1854 = vmatprep.subr.bf16.mxu0 %v2177_v15  ;;  %358 = vmatprep.mubr.bf16.mxu1 %v2181_v14 }
   0xc   :  { %2060 = vset.pattern.permute.xlu0 %v2181_v14 }
   0xe   :  { %70 = vadd.xlane.f32.xlu0 %v69_v3  ;;  %1855 = vmatpush3.bf16.msra.mxu0 %v2062_v16  ;;  %v63_v16 = vld [vmem:[%s2794_s2] sm:$0xff] }
   0xf   :  { %1856 = vmatprep.subr.bf16.mxu0 %v2177_v15 }
  0x12   :  { %1857 = vmatpush3.bf16.msra.mxu0 %v2063_v17  ;;  %v64_v17 = vld [vmem:[%s2794_s2 + $0x8] sm:$0xff] }
  0x13   :  { %1858 = vmatprep.subr.bf16.mxu0 %v2177_v15 }
  0x16   :  { %1859 = vmatpush3.bf16.msra.mxu0 %v2064_v18 }
  0x24   :  { %210 = vrot.lane.b32.xlu0 %v61_v19, %s2179_s28  ;;  %v1990_v19 = vpack.i.bf16 %v64_v17, %v63_v16 }
  0x97   :  { %v68_v4 = vpop.xlane.xlu0 %67 }
  0x98   :  { %v73_v5 = vmul.f32 0.015625, %v68_v4  ;;  %v2071_v4 = vld [vmem:[%s2793_s9 + $0x24] ss:$8 sps:$4 sm:$0xff]  }
  0x9a   :  { %v75_v6 = vsub.f32 %v59_v0, %v73_v5  ;;  %v2068_v0 = vld [vmem:[%s2793_s9 + $0x14] ss:$8 sps:$4 sm:$0xff]  }
  0x9b   :  { %v71_v7 = vpop.xlane.xlu0 %70  ;;  %328 = vmatprep.subr.bf16.mxu1 %v2068_v0 }
  0x9c   :  { %v74_v8 = vmul.f32 0.015625, %v71_v7  ;;  %v77_v9 = vmul.f32 %v75_v6, %v75_v6 }
  0x9e   :  { %v76_v10 = vsub.f32 %v60_v1, %v74_v8  ;;  %v79_v11 = vsel %vm65_vm0, %v77_v9, 0.0  ;;  %v2070_v1 = vld [vmem:[%s2793_s9 + $0x10] ss:$8 sps:$4 sm:$0xff]   ;;  %v2074_v8 = vld [vmem:[%s2793_s9 + $0x34] ss:$8 sps:$4 sm:$0xff]  }
  0x9f   :  { %80 = vadd.xlane.f32.xlu1 %v79_v11  ;;  %v211_v59 = vpop.permute.xlu0 %210  ;;  %329 = vmatpush1.bf16.msra.mxu1 %v2070_v1  ;;  %v2076_v9 = vld [vmem:[%s2793_s9 + $0x30] ss:$8 sps:$4 sm:$0xff]   ;;  %v2079_v11 = vld [vmem:[%s2793_s9 + $0x40] ss:$8 sps:$4 sm:$0xff]  }
  0xa0   :  { %v78_v12 = vmul.f32 %v76_v10, %v76_v10  ;;  %330 = vmatprep.subr.bf16.mxu1 %v2071_v4 }
  0xa2   :  { %v82_v13 = vsel %vm65_vm0, %v78_v12, 0.0  ;;  %v2080_v12 = vld [vmem:[%s2793_s9 + $0x54] ss:$8 sps:$4 sm:$0xff]  }
  0xa3   :  { %83 = vadd.xlane.f32.xlu1 %v82_v13  ;;  %v2082_v13 = vld [vmem:[%s2793_s9 + $0x50] ss:$8 sps:$4 sm:$0xff]  }
  0xb4   :  { %212 = vrot.lane.b32.xlu1 %v62_v20, %s2179_s28 }
 0x12c   :  { %v81_v21 = vpop.xlane.xlu1 %80 }
 0x12d   :  { %v85_v22 = vmul.f32 0.015625, %v81_v21 }
 0x12f   :  { %v87_v23 = vadd.f32 1e-05, %v85_v22 }
 0x130   :  { %v84_v24 = vpop.xlane.xlu1 %83 }
 0x131   :  { %2123 = vrsqrt.f32 %v87_v23  ;;  %v86_v25 = vmul.f32 0.015625, %v84_v24 }
 0x133   :  { %v88_v26 = vadd.f32 1e-05, %v86_v25 }
 0x134   :  { %v213_v5 = vpop.permute.xlu1 %212 }
 0x135   :  { %2125 = vrsqrt.f32 %v88_v26 }
 0x13b   :  { %v2124_v27 = vpop.eup %2123 }
 0x13c   :  { %v91_v28 = vmul.f32 %v2124_v27, %v75_v6  ;;  %v2073_v6 = vld [vmem:[%s2793_s9 + $0x20] ss:$8 sps:$4 sm:$0xff]  }
 0x13d   :  { %331 = vmatpush1.bf16.msra.mxu1 %v2073_v6 }
 0x13e   :  { %v100_v32 = vmul.f32 %v1721_v29, %v91_v28  ;;  %332 = vmatprep.subr.bf16.mxu1 %v2074_v8 }
 0x13f   :  { %v2126_v30 = vpop.eup %2125 }
 0x140   :  { %v92_v31 = vmul.f32 %v2126_v30, %v76_v10  ;;  %v2317_v35 = vadd.f32 %v1722_v33, %v100_v32  ;;  %v2077_v10 = vld [vmem:[%s2793_s9 + $0x44] ss:$8 sps:$4 sm:$0xff]   ;;  %s2182_s9 = smov 64  }
 0x141   :  { %333 = vmatpush1.bf16.msra.mxu1 %v2076_v9  ;;  %v369_v32 = vld [vmem:[%s2795_s12] sm:$0xff] }
 0x142   :  { %v101_v34 = vmul.f32 %v1721_v29, %v92_v31  ;;  %334 = vmatprep.subr.bf16.mxu1 %v2077_v10 }
 0x144   :  { %v2319_v36 = vadd.f32 %v1722_v33, %v101_v34  ;;  %v370_v34 = vld [vmem:[%s2795_s12 + $0x8] sm:$0xff]  ;;  %s2186_s12 = smov 68  }
 0x145   :  { %335 = vmatpush1.bf16.msra.mxu1 %v2079_v11 }
 0x146   :  { %v111_v37 = vpack.c.bf16 %v2319_v36, %v2317_v35  ;;  %336 = vmatprep.subr.bf16.mxu1 %v2080_v12 }
 0x148   :  { %1861 = vmatmul.mubr.msk.bf16.vlgmr.msra.gmra.mrb[0].mxu0 %vm65_vm0, %v111_v37 }
 0x149   :  { %337 = vmatpush1.bf16.msra.mxu1 %v2082_v13  ;;  %v455_v13 = vld [vmem:[%s2798_s10] sm:$0xf]  ;;  %s2188_s10 = smov 48  }
 0x21b   :  { %v2324_v38 = vpop.f32.mrb[0].mxu0 }
 0x21c   :  { %v188_v39 = vadd.f32 0.54132485, %v2324_v38  ;;  %v1862_v40 = vpop.f32.mrb[1].mxu0 }
 0x21d   :  { %v2327_v41 = vpop.f32.mrb[2].mxu0 }
 0x21e   :  { %v192_v42 = vand.u32 2147483647, %v188_v39  ;;  %v189_v43 = vadd.f32 0.54132485, %v2327_v41  ;;  %v1863_v44 = vpop.f32.mrb[3].mxu0  ;;  %v190_v55 = vmax.f32 %v188_v39, 0.0 }
 0x220   :  { %v194_v45 = vsub.f32 0.0, %v192_v42  ;;  %v193_v46 = vand.u32 2147483647, %v189_v43  ;;  %v191_v62 = vmax.f32 %v189_v43, 0.0 }
 0x222   :  { %v196_v47 = vmul.f32 1.442695, %v194_v45  ;;  %v195_v48 = vsub.f32 0.0, %v193_v46  ;;  %v371_v46 = vld [vmem:[%s2796_s13] sm:$0xff] }
 0x224   :  { %2127 = vpow2.f32 %v196_v47  ;;  %v198_v49 = vmul.f32 1.442695, %v195_v48 }
 0x226   :  { %2129 = vpow2.f32 %v198_v49  ;;  %v372_v49 = vld [vmem:[%s2796_s13 + $0x8] sm:$0xff] }
 0x22e   :  { %v2128_v50 = vpop.eup %2127 }
 0x22f   :  { %v200_v51 = vadd.f32 1.0, %v2128_v50 }
 0x230   :  { %v2130_v52 = vpop.eup %2129 }
 0x231   :  { %2131 = vlog2.f32 %v200_v51  ;;  %v201_v53 = vadd.f32 1.0, %v2130_v52 }
 0x233   :  { %2133 = vlog2.f32 %v201_v53 }
 0x23b   :  { %v2132_v54 = vpop.eup %2131 }
 0x23c   :  { %v203_v56 = vmul.f32 0.6931472, %v2132_v54 }
 0x23d   :  { %v2134_v58 = vpop.eup %2133 }
 0x23e   :  { %v2336_v61 = vadd.f32 %v203_v56, %v190_v55  ;;  %v205_v63 = vmul.f32 0.6931472, %v2134_v58 }
 0x240   :  { %v216_v2 = vmul.f32 %v211_v59, %v2336_v61  ;;  %v2345_v3 = vadd.f32 %v205_v63, %v191_v62  ;;  %v373_v62 = vld [vmem:[%s2797_s14] sm:$0xff] }
 0x242   :  { %220 = vrot.lane.b32.xlu1 %v216_v2, %s2180_s25  ;;  %v217_v7 = vmul.f32 %v213_v5, %v2345_v3  ;;  %v374_v2 = vld [vmem:[%s2797_s14 + $0x8] sm:$0xff] }
 0x246   :  { %222 = vrot.lane.b32.xlu1 %v217_v7, %s2180_s25 }
 0x2b4   :  { %v221_v15 = vpop.permute.xlu1 %220 }
 0x2b5   :  { %v2383_v18 = vadd.f32 %v221_v15, %v2324_v38 }
 0x2b7   :  { %230 = vrot.lane.b32.xlu0 %v2383_v18, %s2182_s9 }
 0x2b8   :  { %v223_v20 = vpop.permute.xlu1 %222 }
 0x2b9   :  { %v2388_v21 = vadd.f32 %v223_v20, %v2327_v41 }
 0x2bb   :  { %1991 = vrot.lane.b32.xlu0 %v1990_v19, %s2183_s1  ;;  %232 = vrot.lane.b32.xlu1 %v2388_v21, %s2182_s9 }
 0x329   :  { %v2393_v22 = vpop.permute.xlu0 %230 }
 0x32a   :  { %v2405_v28 = vsel %vm65_vm0, %v2317_v35, %v2393_v22 }
 0x32d   :  { %v1992_v23 = vpop.permute.xlu0 %1991  ;;  %v2395_v24 = vpop.permute.xlu1 %232 }
 0x32e   :  { %v1994_v25 = vunpack.i.h.bf16 %v1992_v23  ;;  %v1993_v26 = vunpack.i.l.bf16 %v1992_v23  ;;  %v2400_v27 = vsel %vm65_vm0, %v2319_v36, %v2395_v24 }
 0x330   :  { %v247_v29 = vsel %vm246_vm2, %v2405_v28, %v1993_v26  ;;  %v248_v30 = vsel %vm246_vm2, %v2400_v27, %v1994_v25 }
 0x331   :  { %v249_v31 = vpack.c.bf16 %v248_v30, %v247_v29 }
 0x333   :  { %1740 = vmatmul.mubr.msk.bf16.vlgmr.msra.gmra.mrb[0].mxu1 %vm322_vm3, %v249_v31 }
 0x406   :  { %v2415_v33 = vpop.f32.mrb[0].mxu1 }
 0x407   :  { %379 = vrot.lane.b32.xlu1 %v2415_v33, %s2184_s18  ;;  %v362_v35 = vpop.f32.mrb[1].mxu1  ;;  %v375_v36 = vmul.f32 %v369_v32, %v2415_v33 }
 0x408   :  { %v2422_v37 = vpop.f32.mrb[2].mxu1 }
 0x409   :  { %381 = vrot.lane.b32.xlu0 %v2422_v37, %s2184_s18  ;;  %v366_v39 = vpop.f32.mrb[3].mxu1  ;;  %v376_v40 = vmul.f32 %v370_v34, %v2422_v37 }
 0x40a   :  { %v2426_v42 = vpack.c.bf16 %v366_v39, %v362_v35  ;;  %v2428_v43 = vpack.i.bf16 %v366_v39, %v362_v35 }
 0x40b   :  { %385 = vrot.lane.b32.xlu1 %v2415_v33, %s2185_s19 }
 0x40d   :  { %387 = vrot.lane.b32.xlu0 %v2422_v37, %s2185_s19  ;;  %s2190_s19 = smov 96  }
 0x40f   :  { %398 = vrot.lane.b32.xlu1 %v2415_v33, %s2186_s12 }
 0x411   :  { %400 = vrot.lane.b32.xlu0 %v2422_v37, %s2186_s12 }
 0x413   :  { %404 = vrot.lane.b32.xlu1 %v2415_v33, %s2187_s8 }
 0x415   :  { %406 = vrot.lane.b32.xlu0 %v2422_v37, %s2187_s8 }
 0x417   :  { %419 = vrot.lane.b32.xlu1 %v369_v32, %s2182_s9 }
 0x419   :  { %421 = vrot.lane.b32.xlu0 %v370_v34, %s2182_s9 }
 0x479   :  { %v380_v44 = vpop.permute.xlu1 %379 }
 0x47b   :  { %v382_v45 = vpop.permute.xlu0 %381 }
 0x47d   :  { %v386_v47 = vpop.permute.xlu1 %385 }
 0x47e   :  { %v427_v48 = vsel %vm391_vm4, %v386_v47, %v380_v44  ;;  %v392_v52 = vsel %vm391_vm4, %v380_v44, %v386_v47 }
 0x47f   :  { %v429_v50 = vmul.f32 %v427_v48, %v371_v46  ;;  %v388_v51 = vpop.permute.xlu0 %387  ;;  %v394_v58 = vmul.f32 %v392_v52, %v371_v46 }
 0x480   :  { %v393_v53 = vsel %vm391_vm4, %v382_v45, %v388_v51  ;;  %v428_v54 = vsel %vm391_vm4, %v388_v51, %v382_v45 }
 0x481   :  { %v395_v55 = vmul.f32 %v393_v53, %v372_v49  ;;  %v430_v56 = vmul.f32 %v428_v54, %v372_v49  ;;  %433 = vrot.lane.b32.xlu1 %v429_v50, %s2182_s9  ;;  %v399_v57 = vpop.permute.xlu1 %398  ;;  %v396_v4 = vadd.f32 %v394_v58, %v375_v36  ;;  %v461_v53 = vld [vmem:[%s2799_s3 + $0x8] sm:$0xff]  ;;  %v460_v58 = vld [vmem:[%s2799_s3] sm:$0xff]  ;;  %s2189_s3 = smov 32  }
 0x483   :  { %v397_v59 = vadd.f32 %v395_v55, %v376_v40  ;;  %435 = vrot.lane.b32.xlu0 %v430_v56, %s2182_s9  ;;  %v401_v60 = vpop.permute.xlu0 %400 }
 0x485   :  { %v405_v63 = vpop.permute.xlu1 %404 }
 0x486   :  { %v411_v0 = vsel %vm410_vm5, %v399_v57, %v405_v63  ;;  %v441_v1 = vsel %vm410_vm5, %v405_v63, %v399_v57 }
 0x487   :  { %v413_v5 = vmul.f32 %v411_v0, %v373_v62  ;;  %v443_v6 = vmul.f32 %v441_v1, %v373_v62  ;;  %v407_v7 = vpop.permute.xlu0 %406 }
 0x488   :  { %v412_v8 = vsel %vm410_vm5, %v401_v60, %v407_v7  ;;  %v442_v9 = vsel %vm410_vm5, %v407_v7, %v401_v60 }
 0x489   :  { %v2452_v10 = vadd.f32 %v413_v5, %v396_v4  ;;  %v414_v11 = vmul.f32 %v412_v8, %v374_v2  ;;  %v444_v12 = vmul.f32 %v442_v9, %v374_v2  ;;  %447 = vrot.lane.b32.xlu1 %v443_v6, %s2182_s9  ;;  %v420_v16 = vpop.permute.xlu1 %419  ;;  %v2519_v4 = vld [vmem:[%s2800_s11] sm:$0xf] }
 0x48a   :  { %v425_v23 = vmul.f32 %v420_v16, %v2415_v33 }
 0x48b   :  { %v2458_v15 = vadd.f32 %v414_v11, %v397_v59  ;;  %1870 = vmatprep.mubr.msk.f32.mxu1 %vm472_vm6, %v2452_v10  ;;  %449 = vrot.lane.b32.xlu0 %v444_v12, %s2182_s9  ;;  %v422_v17 = vpop.permute.xlu0 %421 }
 0x48c   :  { %v426_v25 = vmul.f32 %v422_v17, %v2422_v37 }
 0x48d   :  { %457 = vrot.lane.b32.xlu1 %v455_v13, %s2182_s9 }
 0x4f3   :  { %v434_v19 = vpop.permute.xlu1 %433 }
 0x4f4   :  { %v439_v29 = vadd.f32 %v434_v19, %v425_v23 }
 0x4f5   :  { %v436_v20 = vpop.permute.xlu0 %435 }
 0x4f6   :  { %v440_v30 = vadd.f32 %v436_v20, %v426_v25 }
 0x4fb   :  { %v448_v26 = vpop.permute.xlu1 %447 }
 0x4fc   :  { %v453_v32 = vadd.f32 %v448_v26, %v439_v29 }
 0x4fd   :  { %v450_v31 = vpop.permute.xlu0 %449 }
 0x4fe   :  { %v454_v34 = vadd.f32 %v450_v31, %v440_v30 }
 0x4ff   :  { %v2466_v35 = vpop.permute.xlu1 %457 }
 0x500   :  { %470 = vrot.lane.b32.xlu1 %v2466_v35, %s2182_s9  ;;  %v2470_v36 = vpack.i.bf16 %v454_v34, %v453_v32 }
 0x502   :  { %1996 = vrot.lane.b32.xlu0 %v2470_v36, %s2182_s9 }
 0x504   :  { %676 = vrot.lane.b32.xlu1 %v2466_v35, %s2188_s10 }
 0x506   :  { %2001 = vrot.lane.b32.xlu0 %v2470_v36, %s2188_s10 }
 0x508   :  { %670 = vrot.lane.b32.xlu1 %v2458_v15, %s2180_s25 }
 0x50a   :  { %668 = vrot.lane.b32.xlu0 %v2452_v10, %s2180_s25 }
 0x572   :  { %v471_v45 = vpop.permute.xlu1 %470 }
 0x574   :  { %v1997_v33 = vpop.permute.xlu0 %1996 }
 0x575   :  { %v1999_v37 = vunpack.i.h.bf16 %v1997_v33  ;;  %v1998_v39 = vunpack.i.l.bf16 %v1997_v33 }
 0x576   :  { %v677_v51 = vpop.permute.xlu1 %676 }
 0x577   :  { %v1936_v44 = vpack.c.bf16 %v1999_v37, %v1998_v39 }
 0x578   :  { %v2002_v46 = vpop.permute.xlu0 %2001 }
 0x579   :  { %v2004_v47 = vunpack.i.h.bf16 %v2002_v46  ;;  %v2003_v48 = vunpack.i.l.bf16 %v2002_v46  ;;  %1938 = vmatprep.subr.msk.bf16.mxu1 %vm2484_vm7, %v1936_v44 }
 0x57a   :  { %1941 = vmatpush3.bf16.xpose.msk.msra.mxu1 %vm2484_vm7, %v1936_v44  ;;  %v671_v52 = vpop.permute.xlu1 %670 }
 0x57b   :  { %v1946_v49 = vpack.c.bf16 %v2004_v47, %v2003_v48  ;;  %1868 = vmatprep.subr.msk.mxu1 %vm472_vm6, %v471_v45 }
 0x57c   :  { %v669_v50 = vpop.permute.xlu0 %668 }
 0x57d   :  { %1948 = vmatprep.subr.msk.bf16.mxu0 %vm2484_vm7, %v1946_v49  ;;  %1888 = vmatprep.mubr.msk.f32.mxu0 %vm472_vm6, %v669_v50 }
 0x57e   :  { %1951 = vmatpush3.bf16.xpose.msk.msra.mxu0 %vm2484_vm7, %v1946_v49 }
 0x57f   :  { %1886 = vmatprep.subr.msk.mxu0 %vm472_vm6, %v677_v51 }
 0x582   :  { %1869 = vmatpush3.xpose.msk.msra.mxu1 %vm472_vm6, %v471_v45 }
 0x583   :  { %1943 = vmatprep.subr.bf16.mxu1 %v2426_v42 }
 0x585   :  { %1871 = vmatmul.mubr.msk.f32.vlgmr.msra.gmra.mrb[4].mxu1 %vm472_vm6, %v2458_v15 }
 0x586   :  { %1945 = vmatpush3.bf16.msra.mxu1 %v2426_v42  ;;  %1887 = vmatpush3.xpose.msk.msra.mxu0 %vm472_vm6, %v677_v51 }
 0x587   :  { %1877 = vmatprep.subr.msk.mxu1 %vm587_vm9, %v2519_v4 }
 0x589   :  { %1889 = vmatmul.mubr.msk.f32.vlgmr.msra.gmra.mrb[4].mxu0 %vm472_vm6, %v671_v52 }
 0x58a   :  { %1878 = vmatpush3.msk.msra.mxu1 %vm587_vm9, %v2519_v4 }
 0x658   :  { %v1872_v54 = vpop.f32.mrb[4].mxu1 }
 0x659   :  { %v557_v55 = vadd.f32 %v1872_v54, %v461_v53  ;;  %v551_v56 = vpop.f32.mrb[5].mxu1 }
 0x65a   :  { %v552_v62 = vadd.f32 %v551_v56, %v460_v58 }
 0x65b   :  { %v564_v57 = vsel %vm560_vm8, %v557_v55, -inf }
 0x65c   :  { %v1890_v42 = vpop.f32.mrb[4].mxu0  ;;  %565 = vmax.xlane.f32.xlu1 %v564_v57  ;;  %v561_v1 = vsel %vm560_vm8, %v552_v62, -inf }
 0x65d   :  { %v760_v59 = vadd.f32 %v1890_v42, %v461_v53  ;;  %v754_v60 = vpop.f32.mrb[5].mxu0  ;;  %v462_v42 = vld [vmem:[%s2801_s4] sm:$0xff] }
 0x65e   :  { %v755_v0 = vadd.f32 %v754_v60, %v460_v58  ;;  %v463_v58 = vld [vmem:[%s2801_s4 + $0x8] sm:$0xff] }
 0x65f   :  { %v766_v63 = vsel %vm560_vm8, %v760_v59, -inf }
 0x660   :  { %767 = vmax.xlane.f32.xlu0 %v766_v63  ;;  %v763_v2 = vsel %vm560_vm8, %v755_v0, -inf }
 0x664   :  { %562 = vmax.xlane.f32.xlu0 %v561_v1 }
 0x668   :  { %764 = vmax.xlane.f32.xlu0 %v763_v2 }
 0x66d   :  { %789 = vrot.lane.b32.xlu1 %v2519_v4, %s2180_s25 }
 0x671   :  { %2011 = vrot.lane.b32.xlu1 %v2470_v36, %s2189_s3 }
 0x675   :  { %886 = vrot.lane.b32.xlu1 %v2466_v35, %s2189_s3 }
 0x679   :  { %880 = vrot.lane.b32.xlu1 %v2458_v15, %s2190_s19 }
 0x67d   :  { %997 = vrot.lane.b32.xlu1 %v2519_v4, %s2190_s19 }
 0x67e   :  { %2006 = vrot.lane.b32.xlu0 %v2428_v43, %s2180_s25 }
 0x682   :  { %878 = vrot.lane.b32.xlu0 %v2452_v10, %s2190_s19 }
 0x686   :  { %2016 = vrot.lane.b32.xlu0 %v2428_v43, %s2190_s19 }
 0x6e9   :  { %v566_v5 = vpop.xlane.xlu1 %565 }
 0x6ea   :  { %v568_v7 = vsub.f32 %v557_v55, %v566_v5 }
 0x6ec   :  { %v571_v11 = vmul.f32 1.442695, %v568_v7 }
 0x6ed   :  { %v768_v6 = vpop.xlane.xlu0 %767  ;;  %v790_v23 = vpop.permute.xlu1 %789 }
 0x6ee   :  { %v770_v13 = vsub.f32 %v760_v59, %v768_v6 }
 0x6f0   :  { %v773_v20 = vmul.f32 1.442695, %v770_v13 }
 0x6f1   :  { %v563_v8 = vpop.xlane.xlu0 %562  ;;  %v2012_v32 = vpop.permute.xlu1 %2011 }
 0x6f2   :  { %v567_v9 = vsub.f32 %v552_v62, %v563_v8  ;;  %v2014_v39 = vunpack.i.h.bf16 %v2012_v32  ;;  %v2013_v44 = vunpack.i.l.bf16 %v2012_v32 }
 0x6f4   :  { %v569_v12 = vmul.f32 1.442695, %v567_v9  ;;  %v1956_v49 = vpack.c.bf16 %v2014_v39, %v2013_v44 }
 0x6f5   :  { %v765_v16 = vpop.xlane.xlu0 %764  ;;  %v887_v51 = vpop.permute.xlu1 %886 }
 0x6f6   :  { %2135 = vpow2.f32 %v569_v12  ;;  %v769_v17 = vsub.f32 %v755_v0, %v765_v16 }
 0x6f7   :  { %2137 = vpow2.f32 %v571_v11 }
 0x6f8   :  { %v771_v19 = vmul.f32 1.442695, %v769_v17 }
 0x6f9   :  { %v2007_v25 = vpop.permute.xlu0 %2006  ;;  %v881_v52 = vpop.permute.xlu1 %880 }
 0x6fa   :  { %2139 = vpow2.f32 %v771_v19  ;;  %v2009_v26 = vunpack.i.h.bf16 %v2007_v25  ;;  %v2008_v29 = vunpack.i.l.bf16 %v2007_v25 }
 0x6fb   :  { %2141 = vpow2.f32 %v773_v20 }
 0x6fc   :  { %v1952_v30 = vpack.c.bf16 %v2009_v26, %v2008_v29 }
 0x6fd   :  { %v879_v31 = vpop.permute.xlu0 %878  ;;  %v998_v53 = vpop.permute.xlu1 %997 }
 0x6fe   :  { %1953 = vmatprep.subr.bf16.mxu1 %v1952_v30 }
 0x700   :  { %v2537_v34 = vpop.eup %2135 }
 0x701   :  { %v2539_v33 = vpop.eup %2137  ;;  %1879 = vmatprep.mubr.msk.f32.mxu1 %vm560_vm8, %v2537_v34  ;;  %v2017_v37 = vpop.permute.xlu0 %2016 }
 0x702   :  { %v2019_v45 = vunpack.i.h.bf16 %v2017_v37  ;;  %v2018_v46 = vunpack.i.l.bf16 %v2017_v37  ;;  %1880 = vmatmul.mubr.msk.f32.vlgmr.msra.gmra.mrb[6].mxu1 %vm560_vm8, %v2539_v33 }
 0x703   :  { %1955 = vmatpush3.bf16.msra.mxu1 %v1952_v30 }
 0x704   :  { %v2545_v47 = vpop.eup %2139  ;;  %v1962_v48 = vpack.c.bf16 %v2019_v45, %v2018_v46  ;;  %1895 = vmatprep.subr.msk.mxu1 %vm587_vm9, %v790_v23 }
 0x705   :  { %1897 = vmatprep.mubr.msk.f32.mxu1 %vm560_vm8, %v2545_v47  ;;  %v2550_v50 = vpop.eup %2141  ;;  %v775_v32 = vsel %vm560_vm8, %v2545_v47, 0.0 }
 0x706   :  { %1963 = vmatprep.subr.bf16.mxu0 %v1962_v48 }
 0x707   :  { %1896 = vmatpush3.msk.msra.mxu1 %vm587_vm9, %v790_v23  ;;  %1965 = vmatpush3.bf16.msra.mxu0 %v1962_v48 }
 0x708   :  { %1898 = vmatmul.mubr.msk.f32.vlgmr.msra.gmra.mrb[8].mxu1 %vm560_vm8, %v2550_v50  ;;  %1958 = vmatprep.subr.msk.bf16.mxu1 %vm2484_vm7, %v1956_v49 }
 0x709   :  { %1906 = vmatprep.mubr.msk.f32.mxu1 %vm472_vm6, %v879_v31  ;;  %1913 = vmatprep.subr.msk.mxu0 %vm587_vm9, %v998_v53  ;;  %v778_v31 = vsel %vm560_vm8, %v2550_v50, 0.0 }
 0x70b   :  { %1914 = vmatpush3.msk.msra.mxu0 %vm587_vm9, %v998_v53 }
 0x70e   :  { %1961 = vmatpush3.bf16.xpose.msk.msra.mxu1 %vm2484_vm7, %v1956_v49 }
 0x70f   :  { %1904 = vmatprep.subr.msk.mxu1 %vm472_vm6, %v887_v51 }
 0x716   :  { %1905 = vmatpush3.xpose.msk.msra.mxu1 %vm472_vm6, %v887_v51 }
 0x719   :  { %1907 = vmatmul.mubr.msk.f32.vlgmr.msra.gmra.mrb[10].mxu1 %vm472_vm6, %v881_v52 }
 0x7d5   :  { %v2565_v54 = vpop.f32.mrb[6].mxu1 }
 0x7d6   :  { %v2567_v55 = vpop.f32.mrb[7].mxu1 }
 0x7db   :  { %v2569_v56 = vpop.f32.mrb[8].mxu1 }
 0x7dc   :  { %v2571_v57 = vpop.f32.mrb[9].mxu1 }
 0x7ec   :  { %v1908_v59 = vpop.f32.mrb[10].mxu1 }
 0x7ed   :  { %v970_v60 = vadd.f32 %v1908_v59, %v463_v58  ;;  %v964_v62 = vpop.f32.mrb[11].mxu1 }
 0x7ee   :  { %v965_v63 = vadd.f32 %v964_v62, %v462_v42  ;;  %v573_v62 = vsel %vm560_vm8, %v2537_v34, 0.0 }
 0x7ef   :  { %v976_v0 = vsel %vm560_vm8, %v970_v60, -inf }
 0x7f0   :  { %977 = vmax.xlane.f32.xlu1 %v976_v0  ;;  %v973_v1 = vsel %vm560_vm8, %v965_v63, -inf }
 0x7f1   :  { %974 = vmax.xlane.f32.xlu0 %v973_v1 }
 0x801   :  { %1094 = vrot.lane.b32.xlu1 %v2466_v35, %s2179_s28 }
 0x805   :  { %1088 = vrot.lane.b32.xlu1 %v2458_v15, %s2183_s1 }
 0x807   :  { %2021 = vrot.lane.b32.xlu0 %v2470_v36, %s2179_s28 }
 0x80b   :  { %1086 = vrot.lane.b32.xlu0 %v2452_v10, %s2183_s1 }
 0x87d   :  { %v978_v2 = vpop.xlane.xlu1 %977 }
 0x87e   :  { %v980_v5 = vsub.f32 %v970_v60, %v978_v2  ;;  %v975_v6 = vpop.xlane.xlu0 %974  ;;  %v576_v60 = vsel %vm560_vm8, %v2539_v33, 0.0 }
 0x87f   :  { %v979_v7 = vsub.f32 %v965_v63, %v975_v6 }
 0x880   :  { %v983_v8 = vmul.f32 1.442695, %v980_v5 }
 0x881   :  { %v981_v9 = vmul.f32 1.442695, %v979_v7  ;;  %v1095_v16 = vpop.permute.xlu1 %1094 }
 0x882   :  { %v2022_v11 = vpop.permute.xlu0 %2021 }
 0x883   :  { %2143 = vpow2.f32 %v981_v9  ;;  %v2024_v12 = vunpack.i.h.bf16 %v2022_v11  ;;  %v2023_v13 = vunpack.i.l.bf16 %v2022_v11 }
 0x884   :  { %2145 = vpow2.f32 %v983_v8 }
 0x885   :  { %v1966_v35 = vpack.c.bf16 %v2024_v12, %v2023_v13  ;;  %v1089_v17 = vpop.permute.xlu1 %1088 }
 0x886   :  { %v1087_v10 = vpop.permute.xlu0 %1086 }
 0x887   :  { %1968 = vmatprep.subr.msk.bf16.mxu0 %vm2484_vm7, %v1966_v35 }
 0x88d   :  { %v2144_v15 = vpop.eup %2143 }
 0x88e   :  { %v2146_v36 = vpop.eup %2145  ;;  %1915 = vmatprep.mubr.msk.f32.mxu0 %vm560_vm8, %v2144_v15  ;;  %v985_v37 = vsel %vm560_vm8, %v2144_v15, 0.0 }
 0x88f   :  { %1916 = vmatmul.mubr.msk.f32.vlgmr.msra.gmra.mrb[6].mxu0 %vm560_vm8, %v2146_v36  ;;  %v988_v39 = vsel %vm560_vm8, %v2146_v36, 0.0 }
 0x890   :  { %1971 = vmatpush3.bf16.xpose.msk.msra.mxu0 %vm2484_vm7, %v1966_v35  ;;  %1924 = vmatprep.mubr.msk.f32.mxu0 %vm472_vm6, %v1087_v10 }
 0x891   :  { %1922 = vmatprep.subr.msk.mxu0 %vm472_vm6, %v1095_v16 }
 0x898   :  { %1923 = vmatpush3.xpose.msk.msra.mxu0 %vm472_vm6, %v1095_v16 }
 0x899   :  { %1635 = vmatprep.subr.bf16.mxu0 %v2181_v14 }
 0x89b   :  { %1925 = vmatmul.mubr.msk.f32.vlgmr.msra.gmra.mrb[8].mxu0 %vm472_vm6, %v1089_v17 }
 0x962   :  { %v2600_v19 = vpop.f32.mrb[6].mxu0 }
 0x963   :  { %v2602_v20 = vpop.f32.mrb[7].mxu0 }
 0x96e   :  { %v1926_v23 = vpop.f32.mrb[8].mxu0 }
 0x96f   :  { %v1178_v25 = vadd.f32 %v1926_v23, %v463_v58  ;;  %v1172_v26 = vpop.f32.mrb[9].mxu0 }
 0x970   :  { %v1173_v40 = vadd.f32 %v1172_v26, %v462_v42  ;;  %v2088_v26 = vld [vmem:[%s2803_s15 + $0x14] ss:$8 sps:$4 sm:$0xff]  }
 0x971   :  { %v1184_v29 = vsel %vm560_vm8, %v1178_v25, -inf }
 0x972   :  { %1185 = vmax.xlane.f32.xlu1 %v1184_v29  ;;  %v1181_v30 = vsel %vm560_vm8, %v1173_v40, -inf  ;;  %v2091_v29 = vld [vmem:[%s2803_s15 + $0x24] ss:$8 sps:$4 sm:$0xff]  }
 0x973   :  { %1182 = vmax.xlane.f32.xlu0 %v1181_v30  ;;  %v2089_v30 = vld [vmem:[%s2803_s15 + $0x20] ss:$8 sps:$4 sm:$0xff]  }
 0x983   :  { %1205 = vrot.lane.b32.xlu1 %v2519_v4, %s2183_s1 }
 0x989   :  { %2026 = vrot.lane.b32.xlu0 %v2428_v43, %s2183_s1 }
 0x9a7   :  { %779 = vadd.xlane.f32.xlu1 %v778_v31  ;;  %v2094_v31 = vld [vmem:[%s2803_s15 + $0x34] ss:$8 sps:$4 sm:$0xff]  }
 0x9a8   :  { %776 = vadd.xlane.f32.xlu0 %v775_v32  ;;  %v2092_v32 = vld [vmem:[%s2803_s15 + $0x30] ss:$8 sps:$4 sm:$0xff]  }
 0x9ac   :  { %986 = vadd.xlane.f32.xlu0 %v985_v37  ;;  %v2097_v37 = vld [vmem:[%s2803_s15 + $0x44] ss:$8 sps:$4 sm:$0xff]  }
 0x9b0   :  { %989 = vadd.xlane.f32.xlu0 %v988_v39  ;;  %v2095_v39 = vld [vmem:[%s2803_s15 + $0x40] ss:$8 sps:$4 sm:$0xff]  }
 0x9ff   :  { %v1186_v44 = vpop.xlane.xlu1 %1185 }
 0xa00   :  { %v1188_v45 = vsub.f32 %v1178_v25, %v1186_v44  ;;  %v1183_v4 = vpop.xlane.xlu0 %1182  ;;  %v2085_v25 = vld [vmem:[%s2803_s15 + $0x4] ss:$8 sps:$4 sm:$0xff]   ;;  %v2100_v44 = vld [vmem:[%s2803_s15 + $0x54] ss:$8 sps:$4 sm:$0xff]  }
 0xa01   :  { %v1187_v46 = vsub.f32 %v1173_v40, %v1183_v4  ;;  %v2086_v40 = vld [vmem:[%s2803_s15 + $0x10] ss:$8 sps:$4 sm:$0xff]   ;;  %v2103_v4 = vld [vmem:[%s2803_s15 + $0x64] ss:$8 sps:$4 sm:$0xff]  }
 0xa02   :  { %v1191_v48 = vmul.f32 1.442695, %v1188_v45  ;;  %v2098_v45 = vld [vmem:[%s2803_s15 + $0x50] ss:$8 sps:$4 sm:$0xff]  }
 0xa03   :  { %v1189_v43 = vmul.f32 1.442695, %v1187_v46  ;;  %v1206_v47 = vpop.permute.xlu1 %1205  ;;  %v2101_v46 = vld [vmem:[%s2803_s15 + $0x60] ss:$8 sps:$4 sm:$0xff]  }
 0xa04   :  { %2147 = vpow2.f32 %v1191_v48  ;;  %v2027_v49 = vpop.permute.xlu0 %2026  ;;  %v2106_v48 = vld [vmem:[%s2803_s15 + $0x74] ss:$8 sps:$4 sm:$0xff]  }
 0xa05   :  { %2149 = vpow2.f32 %v1189_v43  ;;  %v2029_v50 = vunpack.i.h.bf16 %v2027_v49  ;;  %v2028_v51 = vunpack.i.l.bf16 %v2027_v49  ;;  %v2104_v43 = vld [vmem:[%s2803_s15 + $0x70] ss:$8 sps:$4 sm:$0xff]  }
 0xa07   :  { %v1972_v52 = vpack.c.bf16 %v2029_v50, %v2028_v51  ;;  %v2109_v51 = vld [vmem:[%s2803_s15 + $0x84] ss:$8 sps:$4 sm:$0xff]  }
 0xa09   :  { %1973 = vmatprep.subr.bf16.mxu1 %v1972_v52 }
 0xa0a   :  { %1975 = vmatpush3.bf16.msra.mxu1 %v1972_v52 }
 0xa0b   :  { %1931 = vmatprep.subr.msk.mxu1 %vm587_vm9, %v1206_v47 }
 0xa0e   :  { %v2148_v53 = vpop.eup %2147  ;;  %1932 = vmatpush3.msk.msra.mxu1 %vm587_vm9, %v1206_v47  ;;  %v2107_v47 = vld [vmem:[%s2803_s15 + $0x80] ss:$8 sps:$4 sm:$0xff]  }
 0xa0f   :  { %v2150_v58 = vpop.eup %2149  ;;  %v1196_v42 = vsel %vm560_vm8, %v2148_v53, 0.0  ;;  %1449 = vmatprep.subr.bf16.mxu1 %v2085_v25  ;;  %v2119_v25 = vld [vmem:[%s2804_s16 + $0x48] sm:$0xff]  }
 0xa10   :  { %1197 = vadd.xlane.f32.xlu1 %v1196_v42  ;;  %1933 = vmatprep.mubr.msk.f32.mxu1 %vm560_vm8, %v2150_v58  ;;  %v1193_v59 = vsel %vm560_vm8, %v2150_v58, 0.0 }
 0xa11   :  { %1194 = vadd.xlane.f32.xlu0 %v1193_v59  ;;  %1934 = vmatmul.mubr.msk.f32.vlgmr.msra.gmra.mrb[12].mxu1 %vm560_vm8, %v2148_v53 }
 0xa14   :  { %577 = vadd.xlane.f32.xlu1 %v576_v60 }
 0xa15   :  { %574 = vadd.xlane.f32.xlu0 %v573_v62 }
 0xa34   :  { %v780_v63 = vpop.xlane.xlu1 %779 }
 0xa35   :  { %2151 = vrcp.f32 %v780_v63  ;;  %v777_v0 = vpop.xlane.xlu0 %776 }
 0xa36   :  { %2153 = vrcp.f32 %v777_v0 }
 0xa39   :  { %v987_v1 = vpop.xlane.xlu0 %986 }
 0xa3a   :  { %2155 = vrcp.f32 %v987_v1 }
 0xa3d   :  { %v990_v2 = vpop.xlane.xlu0 %989 }
 0xa3e   :  { %2157 = vrcp.f32 %v990_v2 }
 0xa3f   :  { %v2152_v5 = vpop.eup %2151 }
 0xa40   :  { %v2154_v6 = vpop.eup %2153  ;;  %v877_v7 = vmul.f32 %v2152_v5, %v2569_v56  ;;  %v22_v56 = vstv %s2802_s7 }
 0xa41   :  { %v876_v8 = vmul.f32 %v2154_v6, %v2571_v57  ;;  %23 = vst [vmem:[#allocation2] sm:$0x1] %v22_v56 }
 0xa43   :  { %v2030_v33 = vpack.i.bf16 %v877_v7, %v876_v8 }
 0xa44   :  { %v2156_v9 = vpop.eup %2155 }
 0xa45   :  { %2031 = vrot.lane.b32.xlu0 %v2030_v33, %s2179_s28  ;;  %v1084_v11 = vmul.f32 %v2156_v9, %v2602_v20 }
 0xa48   :  { %v2158_v34 = vpop.eup %2157 }
 0xa49   :  { %v1085_v12 = vmul.f32 %v2158_v34, %v2600_v19  ;;  %v2083_v19 = vld [vmem:[%s2803_s15] ss:$8 sps:$4 sm:$0xff]  }
 0xa4a   :  { %1450 = vmatpush1.bf16.msra.mxu1 %v2083_v19  ;;  %v2118_v19 = vld [vmem:[%s2804_s16 + $0x40] sm:$0xff]  }
 0xa4b   :  { %v2035_v13 = vpack.i.bf16 %v1085_v12, %v1084_v11  ;;  %1451 = vmatprep.subr.bf16.mxu1 %v2088_v26  ;;  %v2120_v26 = vld [vmem:[%s2804_s16 + $0x50] sm:$0xff]  }
 0xa4d   :  { %2036 = vrot.lane.b32.xlu1 %v2035_v13, %s2189_s3 }
 0xa4e   :  { %1452 = vmatpush1.bf16.msra.mxu1 %v2086_v40  ;;  %v2121_v40 = vld [vmem:[%s2804_s16 + $0x58] sm:$0xff]  }
 0xa4f   :  { %1453 = vmatprep.subr.bf16.mxu1 %v2091_v29 }
 0xa52   :  { %1454 = vmatpush1.bf16.msra.mxu1 %v2089_v30 }
 0xa53   :  { %1455 = vmatprep.subr.bf16.mxu1 %v2094_v31 }
 0xa56   :  { %1456 = vmatpush1.bf16.msra.mxu1 %v2092_v32 }
 0xa57   :  { %1457 = vmatprep.subr.bf16.mxu1 %v2097_v37 }
 0xa5a   :  { %1458 = vmatpush1.bf16.msra.mxu1 %v2095_v39 }
 0xa5b   :  { %1459 = vmatprep.subr.bf16.mxu1 %v2100_v44 }
 0xa5e   :  { %1460 = vmatpush1.bf16.msra.mxu1 %v2098_v45 }
 0xa5f   :  { %1461 = vmatprep.subr.bf16.mxu1 %v2103_v4 }
 0xa62   :  { %1462 = vmatpush1.bf16.msra.mxu1 %v2101_v46 }
 0xa63   :  { %1463 = vmatprep.subr.bf16.mxu1 %v2106_v48 }
 0xa66   :  { %1464 = vmatpush1.bf16.msra.mxu1 %v2104_v43 }
 0xa67   :  { %1465 = vmatprep.subr.bf16.mxu1 %v2109_v51 }
 0xa6a   :  { %1466 = vmatpush1.bf16.msra.mxu1 %v2107_v47 }
 0xa9d   :  { %v1198_v35 = vpop.xlane.xlu1 %1197 }
 0xa9e   :  { %v1195_v15 = vpop.xlane.xlu0 %1194  ;;  %2159 = vrcp.f32 %v1198_v35 }
 0xa9f   :  { %2161 = vrcp.f32 %v1195_v15 }
 0xaa1   :  { %v578_v49 = vpop.xlane.xlu1 %577 }
 0xaa2   :  { %v575_v50 = vpop.xlane.xlu0 %574  ;;  %2163 = vrcp.f32 %v578_v49 }
 0xaa3   :  { %2165 = vrcp.f32 %v575_v50 }
 0xaa8   :  { %v2160_v57 = vpop.eup %2159 }
 0xaa9   :  { %v2162_v10 = vpop.eup %2161 }
 0xaac   :  { %v2164_v53 = vpop.eup %2163 }
 0xaad   :  { %v2166_v42 = vpop.eup %2165  ;;  %v667_v1 = vmul.f32 %v2164_v53, %v2565_v54 }
 0xaae   :  { %v666_v0 = vmul.f32 %v2166_v42, %v2567_v55  ;;  %v1806_v55 = vld [vmem:[#allocation2] ss:$0 sm:$0xff] }
 0xab7   :  { %v2032_v52 = vpop.permute.xlu0 %2031 }
 0xab8   :  { %v2034_v59 = vunpack.i.h.bf16 %v2032_v52  ;;  %v2033_v60 = vunpack.i.l.bf16 %v2032_v52 }
 0xaba   :  { %v1319_v5 = vsel %vm472_vm6, %v667_v1, %v2034_v59  ;;  %v1318_v6 = vsel %vm472_vm6, %v666_v0, %v2033_v60 }
 0xabf   :  { %v2037_v58 = vpop.permute.xlu1 %2036 }
 0xac0   :  { %v2039_v62 = vunpack.i.h.bf16 %v2037_v58  ;;  %v2038_v63 = vunpack.i.l.bf16 %v2037_v58 }
 0xac2   :  { %v1321_v33 = vsel %vm1320_vm10, %v1318_v6, %v2038_v63  ;;  %v1322_v9 = vsel %vm1320_vm10, %v1319_v5, %v2039_v62 }
 0xae4   :  { %v1935_v36 = vpop.f32.mrb[12].mxu1 }
 0xae5   :  { %v1293_v16 = vmul.f32 %v2160_v57, %v1935_v36  ;;  %v1283_v17 = vpop.f32.mrb[13].mxu1 }
 0xae6   :  { %v1292_v20 = vmul.f32 %v2162_v10, %v1283_v17  ;;  %v2110_v10 = vld [vmem:[%s2804_s16] sm:$0xff]   ;;  %v2115_v17 = vld [vmem:[%s2804_s16 + $0x28] sm:$0xff]  }
 0xae7   :  { %1636 = vmatpush1.bf16.msra.mxu0 %v2110_v10 }
 0xae8   :  { %v2040_v23 = vpack.i.bf16 %v1293_v16, %v1292_v20  ;;  %1637 = vmatprep.subr.bf16.mxu0 %v2181_v14  ;;  %v2114_v16 = vld [vmem:[%s2804_s16 + $0x20] sm:$0xff]   ;;  %v2116_v20 = vld [vmem:[%s2804_s16 + $0x30] sm:$0xff]  }
 0xaea   :  { %2041 = vrot.lane.b32.xlu1 %v2040_v23, %s2188_s10  ;;  %v2117_v23 = vld [vmem:[%s2804_s16 + $0x38] sm:$0xff]  }
 0xb5c   :  { %v2042_v2 = vpop.permute.xlu1 %2041 }
 0xb5d   :  { %v2044_v7 = vunpack.i.h.bf16 %v2042_v2  ;;  %v2043_v8 = vunpack.i.l.bf16 %v2042_v2 }
 0xb5f   :  { %v1324_v34 = vsel %vm1323_vm11, %v1321_v33, %v2043_v8  ;;  %v1325_v11 = vsel %vm1323_vm11, %v1322_v9, %v2044_v7 }
 0xb60   :  { %v2050_v12 = vpack.i.bf16 %v1325_v11, %v1324_v34 }
 0xb62   :  { %2051 = vrot.lane.b32.xlu0 %v2050_v12, %s2179_s28  ;;  %2046 = vrot.lane.b32.xlu1 %v2050_v12, %s2183_s1 }
 0xb66   :  { %1683 = vperm.xlu0 %2060, %v1806_v55  }
 0xb6a   :  { %1700 = vrot.lane.b32.xlu0 %v2336_v61, %s2183_s1  ;;  %v2111_v61 = vld [vmem:[%s2804_s16 + $0x8] sm:$0xff]  }
 0xb6b   :  { %1638 = vmatpush1.bf16.msra.mxu0 %v2111_v61 }
 0xb6c   :  { %1639 = vmatprep.subr.bf16.mxu0 %v2181_v14 }
 0xbd4   :  { %v2047_v54 = vpop.permute.xlu1 %2046  ;;  %v2052_v42 = vpop.permute.xlu0 %2051 }
 0xbd5   :  { %v2049_v13 = vunpack.i.h.bf16 %v2047_v54  ;;  %v2048_v35 = vunpack.i.l.bf16 %v2047_v54  ;;  %v2054_v59 = vunpack.i.h.bf16 %v2052_v42  ;;  %v2053_v60 = vunpack.i.l.bf16 %v2052_v42 }
 0xbd7   :  { %v1335_v15 = vsel %vm246_vm2, %v2400_v27, %v2049_v13  ;;  %v1334_v56 = vsel %vm246_vm2, %v2405_v28, %v2048_v35  ;;  %v1337_v36 = vpack.c.bf16 %v2049_v13, %v2048_v35  ;;  %v2112_v27 = vld [vmem:[%s2804_s16 + $0x10] sm:$0xff]   ;;  %v2113_v28 = vld [vmem:[%s2804_s16 + $0x18] sm:$0xff]   ;;  %v1523_v1 = vsel %vm472_vm6, %v2388_v21, %v2054_v59  ;;  %v2176_v13 = vld [vmem:[%s2810_s26 + $0x8] sm:$0xff] }
 0xbd8   :  { %v1336_v57 = vpack.c.bf16 %v1335_v15, %v1334_v56  ;;  %1640 = vmatpush1.bf16.msra.mxu0 %v2112_v27  ;;  %v1522_v2 = vsel %vm472_vm6, %v2383_v18, %v2053_v60  ;;  %v2175_v18 = vld [vmem:[%s2810_s26] sm:$0xff] }
 0xbd9   :  { %1791 = vmatprep.mubr.msk.bf16.mxu1 %vm472_vm6, %v1337_v36  ;;  %1641 = vmatprep.subr.bf16.mxu0 %v2181_v14 }
 0xbda   :  { %1482 = vmatmul.mubr.bf16.vlgmr.msra.gmra.mrb[16].mxu1 %v1336_v57 }
 0xbdc   :  { %1642 = vmatpush1.bf16.msra.mxu0 %v2113_v28 }
 0xbdd   :  { %1643 = vmatprep.subr.bf16.mxu0 %v2181_v14 }
 0xbe0   :  { %1644 = vmatpush1.bf16.msra.mxu0 %v2114_v16 }
 0xbe1   :  { %1645 = vmatprep.subr.bf16.mxu0 %v2181_v14 }
 0xbe4   :  { %1646 = vmatpush1.bf16.msra.mxu0 %v2115_v17 }
 0xbe5   :  { %1647 = vmatprep.subr.bf16.mxu0 %v2181_v14  ;;  %v1684_v7 = vpop.permute.xlu0 %1683 }
 0xbe8   :  { %1648 = vmatpush1.bf16.msra.mxu0 %v2116_v20 }
 0xbe9   :  { %1649 = vmatprep.subr.bf16.mxu0 %v2181_v14  ;;  %v1701_v15 = vpop.permute.xlu0 %1700 }
 0xbec   :  { %1650 = vmatpush1.bf16.msra.mxu0 %v2117_v23 }
 0xbed   :  { %1651 = vmatprep.subr.bf16.mxu0 %v2181_v14 }
 0xbf0   :  { %1652 = vmatpush1.bf16.msra.mxu0 %v2118_v19 }
 0xbf1   :  { %1653 = vmatprep.subr.bf16.mxu0 %v2181_v14 }
 0xbf4   :  { %1654 = vmatpush1.bf16.msra.mxu0 %v2119_v25 }
 0xbf5   :  { %1655 = vmatprep.subr.bf16.mxu0 %v2181_v14 }
 0xbf8   :  { %1656 = vmatpush1.bf16.msra.mxu0 %v2120_v26 }
 0xbf9   :  { %1657 = vmatprep.subr.bf16.mxu0 %v2181_v14 }
 0xbfc   :  { %1658 = vmatpush1.bf16.msra.mxu0 %v2121_v40 }
 0xbfd   :  { %1659 = vmatprep.subr.bf16.mxu0 %v2181_v14  ;;  %v2122_v14 = vld [vmem:[%s2804_s16 + $0x60] sm:$0xff]  }
 0xc00   :  { %1660 = vmatpush1.bf16.msra.mxu0 %v2122_v14 }
 0xcad   :  { %v1483_v29 = vpop.f32.mrb[16].mxu1 }
 0xcae   :  { %v1492_v30 = vsub.f32 0.0, %v1483_v29  ;;  %v1485_v31 = vpop.f32.mrb[17].mxu1 }
 0xcaf   :  { %v1487_v32 = vpop.f32.mrb[18].mxu1 }
 0xcb0   :  { %v1494_v37 = vmul.f32 1.442695, %v1492_v30  ;;  %v1493_v39 = vsub.f32 0.0, %v1487_v32  ;;  %v1489_v44 = vpop.f32.mrb[19].mxu1 }
 0xcb2   :  { %2167 = vpow2.f32 %v1494_v37  ;;  %v1496_v45 = vmul.f32 1.442695, %v1493_v39 }
 0xcb4   :  { %2169 = vpow2.f32 %v1496_v45 }
 0xcbc   :  { %v2168_v4 = vpop.eup %2167 }
 0xcbd   :  { %v1498_v46 = vadd.f32 1.0, %v2168_v4 }
 0xcbe   :  { %v2170_v48 = vpop.eup %2169 }
 0xcbf   :  { %2171 = vrcp.f32 %v1498_v46  ;;  %v1499_v43 = vadd.f32 1.0, %v2170_v48 }
 0xcc1   :  { %2173 = vrcp.f32 %v1499_v43 }
 0xcc9   :  { %v2172_v49 = vpop.eup %2171 }
 0xcca   :  { %v1504_v50 = vmul.f32 %v2172_v49, %v1483_v29 }
 0xccb   :  { %v2174_v51 = vpop.eup %2173 }
 0xccc   :  { %v1506_v52 = vmul.f32 %v1504_v50, %v1485_v31  ;;  %v1505_v47 = vmul.f32 %v2174_v51, %v1487_v32 }
 0xcce   :  { %v1507_v53 = vmul.f32 %v1505_v47, %v1489_v44 }
 0xcd0   :  { %v2055_v58 = vpack.i.bf16 %v1507_v53, %v1506_v52 }
 0xcd2   :  { %2056 = vrot.lane.b32.xlu1 %v2055_v58, %s2183_s1 }
 0xcd6   :  { %1692 = vrot.lane.b32.xlu1 %v2324_v38, %s2183_s1 }
 0xcda   :  { %1694 = vrot.lane.b32.xlu1 %v2327_v41, %s2183_s1 }
 0xcde   :  { %1702 = vrot.lane.b32.xlu1 %v2345_v3, %s2183_s1 }
 0xd44   :  { %v2057_v62 = vpop.permute.xlu1 %2056 }
 0xd45   :  { %v2059_v63 = vunpack.i.h.bf16 %v2057_v62  ;;  %v2058_v0 = vunpack.i.l.bf16 %v2057_v62 }
 0xd47   :  { %v1525_v38 = vsel %vm246_vm2, %v1523_v1, %v2059_v63  ;;  %v1524_v5 = vsel %vm246_vm2, %v1522_v2, %v2058_v0  ;;  %v1527_v41 = vpack.c.bf16 %v2059_v63, %v2058_v0 }
 0xd48   :  { %v1526_v6 = vpack.c.bf16 %v1525_v38, %v1524_v5  ;;  %v1693_v3 = vpop.permute.xlu1 %1692 }
 0xd49   :  { %1805 = vmatprep.mubr.msk.bf16.mxu0 %vm246_vm2, %v1527_v41 }
 0xd4a   :  { %1668 = vmatmul.mubr.bf16.vlgmr.msra.gmra.mrb[12].mxu0 %v1526_v6 }
 0xd4c   :  { %v1695_v34 = vpop.permute.xlu1 %1694 }
 0xd50   :  { %v1703_v10 = vpop.permute.xlu1 %1702 }
 0xe1d   :  { %v1669_v8 = vpop.f32.mrb[12].mxu0 }
 0xe1e   :  { %v1686_v33 = vmul.f32 %v1684_v7, %v1669_v8  ;;  %v1671_v9 = vpop.f32.mrb[13].mxu0 }
 0xe1f   :  { %v1672_v11 = vpop.f32.mrb[14].mxu0 }
 0xe20   :  { %v1688_v21 = vadd.f32 %v2175_v18, %v1686_v33  ;;  %v1687_v12 = vmul.f32 %v1684_v7, %v1672_v11  ;;  %v1674_v55 = vpop.f32.mrb[15].mxu0 }
 0xe22   :  { %v1706_v54 = vsel %vm65_vm0, %v1688_v21, %v2393_v22  ;;  %v1689_v35 = vadd.f32 %v2176_v13, %v1687_v12 }
 0xe23   :  { %v1708_v56 = vsel %vm246_vm2, %v1706_v54, %v1693_v3 }
 0xe24   :  { %v1710_v57 = vsel %vm322_vm3, %v1708_v56, %v1701_v15  ;;  %v1707_v36 = vsel %vm65_vm0, %v1689_v35, %v2395_v24 }
 0xe25   :  { %v1713_v61 = vsel %vm1712_vm12, %v1710_v57, 0.0  ;;  %v1709_v27 = vsel %vm246_vm2, %v1707_v36, %v1695_v34 }
 0xe26   :  { %1715 = vst [vmem:[%s2805_s17] sm:$0xff] %v1713_v61  ;;  %v1711_v22 = vsel %vm322_vm3, %v1709_v27, %v1703_v10 }
 0xe27   :  { %v1714_v28 = vsel %vm1712_vm12, %v1711_v22, 0.0 }
 0xe28   :  { %1716 = vst [vmem:[%s2805_s17 + $0x8] sm:$0xff] %v1714_v28 }

</bundles_post_ra>
